<compile_context>
chip_gen: v7x
topology: tpu7x:2x2x1
jax: 0.10.0
libtpu: 0.0.40
codegen_flags: <defaults>
</compile_context>

<pallas_src>
import functools

import jax
import jax.numpy as jnp
from jax.experimental import pallas as pl
from jax.experimental.pallas import tpu as pltpu


def _round_up(v, m):
    return ((v + m - 1) // m) * m


def _pad2(x, rows, cols):
    r, c = x.shape
    return jnp.pad(x, ((0, rows - r), (0, cols - c)))


def _sage_kernel(a_ref, invdeg_ref, p_ref, invcnt_ref, x_ref,
                 wl1_ref, wr1_ref, b1_ref,
                 wl2_ref, wr2_ref, b2_ref,
                 wlin_ref, blin_ref,
                 out_ref, *, k_hop):
    """One independent block of graphs (all tensors VMEM-resident per grid pt).

    a_ref      : [NPB, NPB] bf16  in-edge COUNT matrix (integers, exact in bf16)
    invdeg_ref : [NPB, 1]   f32   1/in_degree (0 for isolated / padded nodes)
    p_ref      : [GPB, NPB] bf16  graph-membership one-hot (exact in bf16)
    invcnt_ref : [GPB, 1]   f32   1/|graph|
    x_ref      : [NPB, DP]  bf16  node features (zero-padded lanes)
    w*_ref     : bf16 MXU weights;  b*_ref : f32 biases
    out_ref    : [GPB, OP]  f32   lane-dense output block
    """
    h = None
    for hop in range(k_hop):  # k_hop is a static Python int -> unrolled
        wl_ref = wl1_ref if hop == 0 else wl2_ref
        wr_ref = wr1_ref if hop == 0 else wr2_ref
        b_ref = b1_ref if hop == 0 else b2_ref

        # Re-load operands from VMEM per hop (cheap vld, short live ranges).
        x_in = x_ref[...] if hop == 0 else h

        # Sum over in-neighbours with exact integer counts (bf16 MXU, f32
        # accumulate), then scale by the f32 1/deg vector on the VPU -> mean.
        agg = jnp.dot(a_ref[...], x_in,
                      preferred_element_type=jnp.float32) * invdeg_ref[...]

        # SAGEConv: lin_l(mean_agg) + lin_r(x) -- two K-dots, no concat scratch.
        hid = (jnp.dot(agg.astype(jnp.bfloat16), wl_ref[...],
                       preferred_element_type=jnp.float32)
               + jnp.dot(x_in, wr_ref[...],
                         preferred_element_type=jnp.float32)
               + b_ref[...])

        # relu + bias stay in f32 (VPU); cast to bf16 only for the next MXU use.
        h = jnp.maximum(hid, 0.0).astype(jnp.bfloat16)

    # global_mean_pool: exact one-hot sum, then f32 1/|graph| scale.
    pooled = jnp.dot(p_ref[...], h,
                     preferred_element_type=jnp.float32) * invcnt_ref[...]

    # dropout(p=0.5) in eval mode == identity.
    out_ref[...] = (jnp.dot(pooled.astype(jnp.bfloat16), wlin_ref[...],
                            preferred_element_type=jnp.float32) + blin_ref[...])


def prepare_params(params):
    """One-time parameter prep (hoisted out of the per-call path):
    pad to lane-dense multiples of 128, cast MXU operands to bf16."""
    f = params["wl1"].shape[0]
    hdim = params["wl1"].shape[1]
    dp = max(_round_up(f, 128), _round_up(hdim, 128))
    op = _round_up(params["wlin"].shape[1], 128)
    bf16 = jnp.bfloat16
    return {
        "dp": dp, "op": op, "out_dim": params["wlin"].shape[1],
        "wl1": _pad2(params["wl1"], dp, dp).astype(bf16),
        "wr1": _pad2(params["wr1"], dp, dp).astype(bf16),
        "b1": _pad2(params["bl1"], 1, dp),                     # f32
        "wl2": _pad2(params["wl2"], dp, dp).astype(bf16),
        "wr2": _pad2(params["wr2"], dp, dp).astype(bf16),
        "b2": _pad2(params["bl2"], 1, dp),                     # f32
        "wlin": _pad2(params["wlin"], dp, op).astype(bf16),
        "blin": _pad2(params["blin"], 1, op),                  # f32
    }


def prepare_graph(edge_index, batch, num_nodes, num_graphs,
                  nodes_per_block=256, graphs_per_block=32, check=True):
    """One-time graph-structure prep (hoisted out of the per-call path).

    Builds the dense in-edge count matrix, its 1/deg vector, the pooling
    one-hot and its 1/count vector, padded so the node/graph axes split into
    `num_blocks` independent diagonal blocks (graphs must not span blocks --
    contiguous graph batching with <= graphs_per_block graphs covering
    <= nodes_per_block nodes per block satisfies this)."""
    num_blocks = max(pl.cdiv(num_nodes, nodes_per_block),
                     pl.cdiv(num_graphs, graphs_per_block))
    np_ = nodes_per_block * num_blocks
    gp = graphs_per_block * num_blocks

    src, dst = edge_index[0], edge_index[1]
    # A_counts[i, j] = number of edges j -> i  (small integers: exact in bf16)
    adj = jnp.zeros((num_nodes, num_nodes), jnp.float32).at[dst, src].add(1.0)
    deg = adj.sum(axis=1, keepdims=True)
    inv_deg = jnp.where(deg > 0, 1.0 / jnp.maximum(deg, 1.0), 0.0)

    onehot = (batch[None, :] == jnp.arange(num_graphs)[:, None]).astype(jnp.float32)
    cnt = onehot.sum(axis=1, keepdims=True)
    inv_cnt = jnp.where(cnt > 0, 1.0 / jnp.maximum(cnt, 1.0), 0.0)

    a_pad = _pad2(adj, np_, np_)
    p_pad = _pad2(onehot, gp, np_)

    if check:
        # The kernel only reads the diagonal (block, block) tiles of A and P;
        # assert all off-diagonal-block mass is zero (graphs don't span blocks).
        nb = jnp.arange(np_) // nodes_per_block
        gb = jnp.arange(gp) // graphs_per_block
        assert bool(jnp.all(jnp.where(nb[:, None] != nb[None, :], a_pad, 0.0) == 0.0))
        assert bool(jnp.all(jnp.where(gb[:, None] != nb[None, :], p_pad, 0.0) == 0.0))

    return {
        "num_blocks": num_blocks,
        "nodes_per_block": nodes_per_block,
        "graphs_per_block": graphs_per_block,
        "np": np_, "gp": gp,
        "a": a_pad.astype(jnp.bfloat16),        # integer counts: exact in bf16
        "inv_deg": _pad2(inv_deg, np_, 1),      # f32
        "p": p_pad.astype(jnp.bfloat16),        # 0/1: exact in bf16
        "inv_cnt": _pad2(inv_cnt, gp, 1),       # f32
    }


def sage_forward(x, graph, pparams, k_hop, num_graphs):
    """Per-call path: pad/cast x (the only per-call prep) + one pallas_call."""
    assert k_hop >= 1
    np_, gp = graph["np"], graph["gp"]
    npb, gpb = graph["nodes_per_block"], graph["graphs_per_block"]
    nblk = graph["num_blocks"]
    dp, op = pparams["dp"], pparams["op"]

    x_p = _pad2(x, np_, dp).astype(jnp.bfloat16)

    bcast = lambda b: (0, 0)  # weights: same (only) block for every grid point
    kernel = functools.partial(_sage_kernel, k_hop=k_hop)

    out_pad = pl.pallas_call(
        kernel,
        out_shape=jax.ShapeDtypeStruct((gp, op), jnp.float32),
        grid=(nblk,),
        in_specs=[
            pl.BlockSpec((npb, npb), lambda b: (b, b)),   # A (diagonal block)
            pl.BlockSpec((npb, 1),   lambda b: (b, 0)),   # 1/deg
            pl.BlockSpec((gpb, npb), lambda b: (b, b)),   # P (diagonal block)
            pl.BlockSpec((gpb, 1),   lambda b: (b, 0)),   # 1/|graph|
            pl.BlockSpec((npb, dp),  lambda b: (b, 0)),   # x
            pl.BlockSpec((dp, dp), bcast),                # wl1
            pl.BlockSpec((dp, dp), bcast),                # wr1
            pl.BlockSpec((1, dp),  bcast),                # b1
            pl.BlockSpec((dp, dp), bcast),                # wl2
            pl.BlockSpec((dp, dp), bcast),                # wr2
            pl.BlockSpec((1, dp),  bcast),                # b2
            pl.BlockSpec((dp, op), bcast),                # wlin
            pl.BlockSpec((1, op),  bcast),                # blin
        ],
        out_specs=pl.BlockSpec((gpb, op), lambda b: (b, 0)),   # lane-dense out
        compiler_params=pltpu.CompilerParams(
            dimension_semantics=("parallel",)),  # shards blocks across TCs (v7x)
    )(graph["a"], graph["inv_deg"], graph["p"], graph["inv_cnt"], x_p,
      pparams["wl1"], pparams["wr1"], pparams["b1"],
      pparams["wl2"], pparams["wr2"], pparams["b2"],
      pparams["wlin"], pparams["blin"])

    return out_pad[:num_graphs, :pparams["out_dim"]]


def init_params(key, in_channels, hidden_channels):
    ks = jax.random.split(key, 7)
    s = 0.1
    return {
        # conv1: SAGEConv(20, H): lin_l (bias) on aggregated, lin_r (no bias) on root
        "wl1": (s * jax.random.normal(ks[0], (in_channels, hidden_channels))).astype(jnp.float32),
        "bl1": (s * jax.random.normal(ks[3], (1, hidden_channels))).astype(jnp.float32),
        "wr1": (s * jax.random.normal(ks[1], (in_channels, hidden_channels))).astype(jnp.float32),
        # conv2: SAGEConv(H, H)
        "wl2": (s * jax.random.normal(ks[2], (hidden_channels, hidden_channels))).astype(jnp.float32),
        "bl2": (s * jax.random.normal(ks[4], (1, hidden_channels))).astype(jnp.float32),
        "wr2": (s * jax.random.normal(ks[5], (hidden_channels, hidden_channels))).astype(jnp.float32),
        # lin: Linear(H, 2)
        "wlin": (s * jax.random.normal(ks[6], (hidden_channels, 2))).astype(jnp.float32),
        "blin": jnp.zeros((1, 2), jnp.float32),
    }


def sage_reference(x, edge_index, batch, num_graphs, params, k_hop):
    """Pure-JAX f32 reference of the PyTorch module (eval mode)."""
    n = x.shape[0]
    src, dst = edge_index[0], edge_index[1]
    adj = jnp.zeros((n, n), jnp.float32).at[dst, src].add(1.0)
    deg = adj.sum(axis=1, keepdims=True)
    a_mean = jnp.where(deg > 0, adj / jnp.maximum(deg, 1.0), 0.0)
    h = x
    for hop in range(k_hop):
        wl = params["wl1"] if hop == 0 else params["wl2"]
        wr = params["wr1"] if hop == 0 else params["wr2"]
        b = params["bl1"] if hop == 0 else params["bl2"]
        h = jnp.maximum((a_mean @ h) @ wl + h @ wr + b, 0.0)
    onehot = (batch[None, :] == jnp.arange(num_graphs)[:, None]).astype(jnp.float32)
    pooled = (onehot @ h) / jnp.maximum(onehot.sum(axis=1, keepdims=True), 1.0)
    return pooled @ params["wlin"] + params["blin"]


if __name__ == "__main__":
    IN_CH = 20             # SAGEConv(20, hidden) input feature size (fixed by module)
    HIDDEN = 32
    K_HOP = 2
    N_GRAPHS = 64          # 2 blocks x 32 graphs
    NODES_PER_GRAPH = 8    # -> 512 nodes = 2 blocks x 256 (feeds 256-wide MXU)
    EDGES_PER_GRAPH = 20
    N_NODES = N_GRAPHS * NODES_PER_GRAPH

    key = jax.random.PRNGKey(0)
    k_x, k_e, k_p = jax.random.split(key, 3)

    x = jax.random.normal(k_x, (N_NODES, IN_CH), dtype=jnp.float32)

    # Deterministic random edges, kept within each graph's contiguous node range.
    ke1, ke2 = jax.random.split(k_e)
    src_local = jax.random.randint(ke1, (N_GRAPHS, EDGES_PER_GRAPH), 0, NODES_PER_GRAPH)
    dst_local = jax.random.randint(ke2, (N_GRAPHS, EDGES_PER_GRAPH), 0, NODES_PER_GRAPH)
    offsets = (jnp.arange(N_GRAPHS) * NODES_PER_GRAPH)[:, None]
    edge_index = jnp.stack([(src_local + offsets).reshape(-1),
                            (dst_local + offsets).reshape(-1)], axis=0).astype(jnp.int32)
    batch = jnp.repeat(jnp.arange(N_GRAPHS, dtype=jnp.int32), NODES_PER_GRAPH)

    params = init_params(k_p, IN_CH, HIDDEN)

    # One-time prep (hoisted out of the per-call path).
    pparams = prepare_params(params)
    graph = prepare_graph(edge_index, batch, N_NODES, N_GRAPHS,
                          nodes_per_block=256, graphs_per_block=32)

    out = sage_forward(x, graph, pparams, K_HOP, N_GRAPHS)
    out = jax.block_until_ready(out)
    assert out.shape == (N_GRAPHS, 2) and out.dtype == jnp.float32
    assert bool(jnp.all(jnp.isfinite(out)))

    # Correctness vs. f32 reference (kernel uses bf16 MXU inputs -> loose tol).
    ref = sage_reference(x, edge_index, batch, N_GRAPHS, params, K_HOP)
    assert bool(jnp.allclose(out, ref, atol=5e-2, rtol=5e-2)), \
        float(jnp.max(jnp.abs(out - ref)))

    print("KERNEL_OK")
</pallas_src>

<mosaic_0001>
module attributes {stable_mosaic.version = 11 : i64} {
  func.func @_sage_kernel(%arg0: i32, %arg1: memref<256x256xbf16, #tpu.memory_space<vmem>>, %arg2: memref<256x1xf32, #tpu.memory_space<vmem>>, %arg3: memref<32x256xbf16, #tpu.memory_space<vmem>>, %arg4: memref<32x1xf32, #tpu.memory_space<vmem>>, %arg5: memref<256x128xbf16, #tpu.memory_space<vmem>>, %arg6: memref<128x128xbf16, #tpu.memory_space<vmem>>, %arg7: memref<128x128xbf16, #tpu.memory_space<vmem>>, %arg8: memref<1x128xf32, #tpu.memory_space<vmem>>, %arg9: memref<128x128xbf16, #tpu.memory_space<vmem>>, %arg10: memref<128x128xbf16, #tpu.memory_space<vmem>>, %arg11: memref<1x128xf32, #tpu.memory_space<vmem>>, %arg12: memref<128x128xbf16, #tpu.memory_space<vmem>>, %arg13: memref<1x128xf32, #tpu.memory_space<vmem>>, %arg14: memref<32x128xf32, #tpu.memory_space<vmem>>) attributes {dimension_semantics = [#tpu.dimension_semantics<parallel>], iteration_bounds = array<i64: 2>, scalar_prefetch = 0 : i64, scratch_operands = 0 : i64, tpu.core_type = #tpu.core_type<tc>, window_params = [{transform_indices = @transform_0, window_bounds = array<i64: 256, 256>}, {transform_indices = @transform_1, window_bounds = array<i64: 256, 1>}, {transform_indices = @transform_2, window_bounds = array<i64: 32, 256>}, {transform_indices = @transform_3, window_bounds = array<i64: 32, 1>}, {transform_indices = @transform_4, window_bounds = array<i64: 256, 128>}, {pipeline_mode = #tpu.pipeline_mode<synchronous>, transform_indices = @transform_5, window_bounds = array<i64: 128, 128>}, {pipeline_mode = #tpu.pipeline_mode<synchronous>, transform_indices = @transform_6, window_bounds = array<i64: 128, 128>}, {pipeline_mode = #tpu.pipeline_mode<synchronous>, transform_indices = @transform_7, window_bounds = array<i64: 1, 128>}, {pipeline_mode = #tpu.pipeline_mode<synchronous>, transform_indices = @transform_8, window_bounds = array<i64: 128, 128>}, {pipeline_mode = #tpu.pipeline_mode<synchronous>, transform_indices = @transform_9, window_bounds = array<i64: 128, 128>}, {pipeline_mode = #tpu.pipeline_mode<synchronous>, transform_indices = @transform_10, window_bounds = array<i64: 1, 128>}, {pipeline_mode = #tpu.pipeline_mode<synchronous>, transform_indices = @transform_11, window_bounds = array<i64: 128, 128>}, {pipeline_mode = #tpu.pipeline_mode<synchronous>, transform_indices = @transform_12, window_bounds = array<i64: 1, 128>}, {transform_indices = @transform_13, window_bounds = array<i64: 32, 128>}]} {
    %c0 = arith.constant 0 : index
    %c0_0 = arith.constant 0 : index
    %0 = vector.load %arg5[%c0, %c0_0] : memref<256x128xbf16, #tpu.memory_space<vmem>>, vector<256x128xbf16>
    %c0_1 = arith.constant 0 : index
    %c0_2 = arith.constant 0 : index
    %1 = vector.load %arg1[%c0_1, %c0_2] : memref<256x256xbf16, #tpu.memory_space<vmem>>, vector<256x256xbf16>
    %cst = arith.constant dense<0.000000e+00> : vector<256x128xf32>
    %2 = tpu.matmul %1, %0, %cst {dimension_numbers = #tpu.dot_dimension_numbers<[1], [0], [0], [1], [0, 0, 1, 1], [], []>} : vector<256x256xbf16>, vector<256x128xbf16>, vector<256x128xf32> -> vector<256x128xf32>
    %c0_3 = arith.constant 0 : index
    %c0_4 = arith.constant 0 : index
    %3 = vector.load %arg2[%c0_3, %c0_4] : memref<256x1xf32, #tpu.memory_space<vmem>>, vector<256x1xf32>
    %4 = vector.broadcast %3 : vector<256x1xf32> to vector<256x128xf32>
    %5 = arith.mulf %2, %4 : vector<256x128xf32>
    %6 = arith.truncf %5 : vector<256x128xf32> to vector<256x128xbf16>
    %c0_5 = arith.constant 0 : index
    %c0_6 = arith.constant 0 : index
    %7 = vector.load %arg6[%c0_5, %c0_6] : memref<128x128xbf16, #tpu.memory_space<vmem>>, vector<128x128xbf16>
    %cst_7 = arith.constant dense<0.000000e+00> : vector<256x128xf32>
    %8 = tpu.matmul %6, %7, %cst_7 {dimension_numbers = #tpu.dot_dimension_numbers<[1], [0], [0], [1], [0, 0, 1, 1], [], []>} : vector<256x128xbf16>, vector<128x128xbf16>, vector<256x128xf32> -> vector<256x128xf32>
    %c0_8 = arith.constant 0 : index
    %c0_9 = arith.constant 0 : index
    %9 = vector.load %arg7[%c0_8, %c0_9] : memref<128x128xbf16, #tpu.memory_space<vmem>>, vector<128x128xbf16>
    %cst_10 = arith.constant dense<0.000000e+00> : vector<256x128xf32>
    %10 = tpu.matmul %0, %9, %cst_10 {dimension_numbers = #tpu.dot_dimension_numbers<[1], [0], [0], [1], [0, 0, 1, 1], [], []>} : vector<256x128xbf16>, vector<128x128xbf16>, vector<256x128xf32> -> vector<256x128xf32>
    %11 = arith.addf %8, %10 : vector<256x128xf32>
    %c0_11 = arith.constant 0 : index
    %c0_12 = arith.constant 0 : index
    %12 = vector.load %arg8[%c0_11, %c0_12] : memref<1x128xf32, #tpu.memory_space<vmem>>, vector<1x128xf32>
    %13 = vector.broadcast %12 : vector<1x128xf32> to vector<256x128xf32>
    %14 = arith.addf %11, %13 : vector<256x128xf32>
    %cst_13 = arith.constant 0.000000e+00 : f32
    %15 = vector.broadcast %cst_13 : f32 to vector<256x128xf32>
    %16 = arith.maximumf %14, %15 : vector<256x128xf32>
    %17 = arith.truncf %16 : vector<256x128xf32> to vector<256x128xbf16>
    %c0_14 = arith.constant 0 : index
    %c0_15 = arith.constant 0 : index
    %18 = vector.load %arg1[%c0_14, %c0_15] : memref<256x256xbf16, #tpu.memory_space<vmem>>, vector<256x256xbf16>
    %cst_16 = arith.constant dense<0.000000e+00> : vector<256x128xf32>
    %19 = tpu.matmul %18, %17, %cst_16 {dimension_numbers = #tpu.dot_dimension_numbers<[1], [0], [0], [1], [0, 0, 1, 1], [], []>} : vector<256x256xbf16>, vector<256x128xbf16>, vector<256x128xf32> -> vector<256x128xf32>
    %c0_17 = arith.constant 0 : index
    %c0_18 = arith.constant 0 : index
    %20 = vector.load %arg2[%c0_17, %c0_18] : memref<256x1xf32, #tpu.memory_space<vmem>>, vector<256x1xf32>
    %21 = vector.broadcast %20 : vector<256x1xf32> to vector<256x128xf32>
    %22 = arith.mulf %19, %21 : vector<256x128xf32>
    %23 = arith.truncf %22 : vector<256x128xf32> to vector<256x128xbf16>
    %c0_19 = arith.constant 0 : index
    %c0_20 = arith.constant 0 : index
    %24 = vector.load %arg9[%c0_19, %c0_20] : memref<128x128xbf16, #tpu.memory_space<vmem>>, vector<128x128xbf16>
    %cst_21 = arith.constant dense<0.000000e+00> : vector<256x128xf32>
    %25 = tpu.matmul %23, %24, %cst_21 {dimension_numbers = #tpu.dot_dimension_numbers<[1], [0], [0], [1], [0, 0, 1, 1], [], []>} : vector<256x128xbf16>, vector<128x128xbf16>, vector<256x128xf32> -> vector<256x128xf32>
    %c0_22 = arith.constant 0 : index
    %c0_23 = arith.constant 0 : index
    %26 = vector.load %arg10[%c0_22, %c0_23] : memref<128x128xbf16, #tpu.memory_space<vmem>>, vector<128x128xbf16>
    %cst_24 = arith.constant dense<0.000000e+00> : vector<256x128xf32>
    %27 = tpu.matmul %17, %26, %cst_24 {dimension_numbers = #tpu.dot_dimension_numbers<[1], [0], [0], [1], [0, 0, 1, 1], [], []>} : vector<256x128xbf16>, vector<128x128xbf16>, vector<256x128xf32> -> vector<256x128xf32>
    %28 = arith.addf %25, %27 : vector<256x128xf32>
    %c0_25 = arith.constant 0 : index
    %c0_26 = arith.constant 0 : index
    %29 = vector.load %arg11[%c0_25, %c0_26] : memref<1x128xf32, #tpu.memory_space<vmem>>, vector<1x128xf32>
    %30 = vector.broadcast %29 : vector<1x128xf32> to vector<256x128xf32>
    %31 = arith.addf %28, %30 : vector<256x128xf32>
    %cst_27 = arith.constant 0.000000e+00 : f32
    %32 = vector.broadcast %cst_27 : f32 to vector<256x128xf32>
    %33 = arith.maximumf %31, %32 : vector<256x128xf32>
    %34 = arith.truncf %33 : vector<256x128xf32> to vector<256x128xbf16>
    %c0_28 = arith.constant 0 : index
    %c0_29 = arith.constant 0 : index
    %35 = vector.load %arg3[%c0_28, %c0_29] : memref<32x256xbf16, #tpu.memory_space<vmem>>, vector<32x256xbf16>
    %cst_30 = arith.constant dense<0.000000e+00> : vector<32x128xf32>
    %36 = tpu.matmul %35, %34, %cst_30 {dimension_numbers = #tpu.dot_dimension_numbers<[1], [0], [0], [1], [0, 0, 1, 1], [], []>} : vector<32x256xbf16>, vector<256x128xbf16>, vector<32x128xf32> -> vector<32x128xf32>
    %c0_31 = arith.constant 0 : index
    %c0_32 = arith.constant 0 : index
    %37 = vector.load %arg4[%c0_31, %c0_32] : memref<32x1xf32, #tpu.memory_space<vmem>>, vector<32x1xf32>
    %38 = vector.broadcast %37 : vector<32x1xf32> to vector<32x128xf32>
    %39 = arith.mulf %36, %38 : vector<32x128xf32>
    %40 = arith.truncf %39 : vector<32x128xf32> to vector<32x128xbf16>
    %c0_33 = arith.constant 0 : index
    %c0_34 = arith.constant 0 : index
    %41 = vector.load %arg12[%c0_33, %c0_34] : memref<128x128xbf16, #tpu.memory_space<vmem>>, vector<128x128xbf16>
    %cst_35 = arith.constant dense<0.000000e+00> : vector<32x128xf32>
    %42 = tpu.matmul %40, %41, %cst_35 {dimension_numbers = #tpu.dot_dimension_numbers<[1], [0], [0], [1], [0, 0, 1, 1], [], []>} : vector<32x128xbf16>, vector<128x128xbf16>, vector<32x128xf32> -> vector<32x128xf32>
    %c0_36 = arith.constant 0 : index
    %c0_37 = arith.constant 0 : index
    %43 = vector.load %arg13[%c0_36, %c0_37] : memref<1x128xf32, #tpu.memory_space<vmem>>, vector<1x128xf32>
    %44 = vector.broadcast %43 : vector<1x128xf32> to vector<32x128xf32>
    %45 = arith.addf %42, %44 : vector<32x128xf32>
    %c0_38 = arith.constant 0 : index
    %c0_39 = arith.constant 0 : index
    %46 = vector.load %arg14[%c0_38, %c0_39] : memref<32x128xf32, #tpu.memory_space<vmem>>, vector<32x128xf32>
    tpu.vector_store %arg14[%c0_38, %c0_39], %45 {strides = array<i32>} : memref<32x128xf32, #tpu.memory_space<vmem>>, vector<32x128xf32>,
    return
  }
  func.func @transform_0(%arg0: i32) -> (i32, i32) {
    %c0_i32 = arith.constant 0 : i32
    return %arg0, %arg0 : i32, i32
  }
  func.func @transform_1(%arg0: i32) -> (i32, i32) {
    %c0_i32 = arith.constant 0 : i32
    %c0_i32_0 = arith.constant 0 : i32
    return %arg0, %c0_i32 : i32, i32
  }
  func.func @transform_2(%arg0: i32) -> (i32, i32) {
    %c0_i32 = arith.constant 0 : i32
    return %arg0, %arg0 : i32, i32
  }
  func.func @transform_3(%arg0: i32) -> (i32, i32) {
    %c0_i32 = arith.constant 0 : i32
    %c0_i32_0 = arith.constant 0 : i32
    return %arg0, %c0_i32 : i32, i32
  }
  func.func @transform_4(%arg0: i32) -> (i32, i32) {
    %c0_i32 = arith.constant 0 : i32
    %c0_i32_0 = arith.constant 0 : i32
    return %arg0, %c0_i32 : i32, i32
  }
  func.func @transform_5(%arg0: i32) -> (i32, i32) {
    %c0_i32 = arith.constant 0 : i32
    %c0_i32_0 = arith.constant 0 : i32
    %c0_i32_1 = arith.constant 0 : i32
    return %c0_i32, %c0_i32_0 : i32, i32
  }
  func.func @transform_6(%arg0: i32) -> (i32, i32) {
    %c0_i32 = arith.constant 0 : i32
    %c0_i32_0 = arith.constant 0 : i32
    %c0_i32_1 = arith.constant 0 : i32
    return %c0_i32, %c0_i32_0 : i32, i32
  }
  func.func @transform_7(%arg0: i32) -> (i32, i32) {
    %c0_i32 = arith.constant 0 : i32
    %c0_i32_0 = arith.constant 0 : i32
    %c0_i32_1 = arith.constant 0 : i32
    return %c0_i32, %c0_i32_0 : i32, i32
  }
  func.func @transform_8(%arg0: i32) -> (i32, i32) {
    %c0_i32 = arith.constant 0 : i32
    %c0_i32_0 = arith.constant 0 : i32
    %c0_i32_1 = arith.constant 0 : i32
    return %c0_i32, %c0_i32_0 : i32, i32
  }
  func.func @transform_9(%arg0: i32) -> (i32, i32) {
    %c0_i32 = arith.constant 0 : i32
    %c0_i32_0 = arith.constant 0 : i32
    %c0_i32_1 = arith.constant 0 : i32
    return %c0_i32, %c0_i32_0 : i32, i32
  }
  func.func @transform_10(%arg0: i32) -> (i32, i32) {
    %c0_i32 = arith.constant 0 : i32
    %c0_i32_0 = arith.constant 0 : i32
    %c0_i32_1 = arith.constant 0 : i32
    return %c0_i32, %c0_i32_0 : i32, i32
  }
  func.func @transform_11(%arg0: i32) -> (i32, i32) {
    %c0_i32 = arith.constant 0 : i32
    %c0_i32_0 = arith.constant 0 : i32
    %c0_i32_1 = arith.constant 0 : i32
    return %c0_i32, %c0_i32_0 : i32, i32
  }
  func.func @transform_12(%arg0: i32) -> (i32, i32) {
    %c0_i32 = arith.constant 0 : i32
    %c0_i32_0 = arith.constant 0 : i32
    %c0_i32_1 = arith.constant 0 : i32
    return %c0_i32, %c0_i32_0 : i32, i32
  }
  func.func @transform_13(%arg0: i32) -> (i32, i32) {
    %c0_i32 = arith.constant 0 : i32
    %c0_i32_0 = arith.constant 0 : i32
    return %arg0, %c0_i32 : i32, i32
  }
}

</mosaic_0001>

<bundles_post_ra>
// kernel: tpu_custom_call.1
= control target key start
LH: loop header
LB: loop body
LE: loop exit
PB: predicated region body
PF: predicated region fallthrough
CT: control target
= control target key end

     0   :  { %s5140_s0 = inlined_call_operand.hbm [shape: bf16[512,512], index: 0, kind: input, shape index: {}]   ;;  %s5141_s1 = inlined_call_operand.vmem [shape: f32[512,1], index: 1, kind: input, shape index: {}]   ;;  %s5142_s2 = inlined_call_operand.vmem [shape: bf16[64,512], index: 2, kind: input, shape index: {}]   ;;  %s5143_s3 = inlined_call_operand.vmem [shape: f32[64,1], index: 3, kind: input, shape index: {}]   ;;  %s5144_s4 = inlined_call_operand.vmem [shape: bf16[512,128], index: 4, kind: input, shape index: {}]   ;;  %s5145_s5 = inlined_call_operand.vmem [shape: bf16[128,128], index: 5, kind: input, shape index: {}]   ;;  %s5146_s6 = inlined_call_operand.vmem [shape: bf16[128,128], index: 6, kind: input, shape index: {}]   ;;  %s5147_s7 = inlined_call_operand.vmem [shape: f32[1,128], index: 7, kind: input, shape index: {}]   ;;  %s5148_s8 = inlined_call_operand.vmem [shape: bf16[128,128], index: 8, kind: input, shape index: {}]   ;;  %s5149_s9 = inlined_call_operand.hbm [shape: bf16[128,128], index: 9, kind: input, shape index: {}]   ;;  %s5150_s10 = inlined_call_operand.vmem [shape: f32[1,128], index: 10, kind: input, shape index: {}]   ;;  %s5151_s11 = inlined_call_operand.hbm [shape: bf16[128,128], index: 11, kind: input, shape index: {}]   ;;  %s5152_s12 = inlined_call_operand.vmem [shape: f32[1,128], index: 12, kind: input, shape index: {}]   ;;  %s5153_s13 = inlined_call_operand.hbm [shape: f32[64,128], index: 13, kind: output, shape index: {}]  }
   0x1   :  { %5179 = sst [smem:[#allocation31_spill]] %s5140_s0 }
   0x2   :  { %5180 = sst [smem:[#allocation32_spill]] %s5148_s8 }
   0x3   :  { %5181 = sst [smem:[#allocation33_spill]] %s5149_s9 }
   0x4   :  { %5182 = sst [smem:[#allocation34_spill]] %s5150_s10 }
   0x5   :  { %5183 = sst [smem:[#allocation35_spill]] %s5152_s12 }
   0x6   :  { %5184 = sst [smem:[#allocation36_spill]] %s5153_s13 }
   0x7   :  { %18 = vsyncpa [#allocation3], 0 }
   0x8   :  { %20 = vsyncpa [#allocation3 + $0x1], 0 }
   0x9   :  { %21 = vsyncpa [#allocation7], 0 }
   0xa   :  { %22 = vsyncpa [#allocation4], 0 }
   0xb   :  { %24 = vsyncpa [#allocation4 + $0x1], 0  ;;  %s4278_s25 = smov 0   ;;  %s4280_s26 = smov 0  }
   0xc   :  { %s4282_s27 = smov 0   ;;  %s4284_s28 = smov 0  }
   0xd   :  { %s4286_s29 = smov 0   ;;  %s4288_s30 = smov 0  }
   0xe   :  { %s4290_s14 = smov 0  }
   0xf LB: > { %5185 = sst [smem:[#allocation13_spill]] %s4170_s25  ;;  %s4312_s15 = sadd.s32 4294967295, %s4194_s14   ;;  %s4194_s14 = sphi %s4290_s14, %s5237_s14   ;;  %s4190_s30 = sphi %s4288_s30, %s5244_s30   ;;  %s4186_s29 = sphi %s4286_s29, %s5243_s29   ;;  %s4182_s28 = sphi %s4284_s28, %s5242_s28   ;;  %s4178_s27 = sphi %s4282_s27, %s5240_s27   ;;  %s4174_s26 = sphi %s4280_s26, %s5239_s26   ;;  %s4170_s25 = sphi %s4278_s25, %s5238_s25  }
  0x10   : > { %5186 = sst [smem:[#allocation14_spill]] %s4174_s26  ;;  %s3034_s16 = sadd.s32 4294967294, %s4194_s14  }
  0x11   : > { %5187 = sst [smem:[#allocation15_spill]] %s4178_s27  ;;  %s4316_s17 = sadd.s32 1, %s4194_s14  }
  0x12   : > { %5188 = sst [smem:[#allocation16_spill]] %s4316_s17  ;;  %s39_s18 = sadd.s32 1, %s4190_s30 }
  0x13   : > { %s34_s19 = ssub.s32 %s4194_s14, %s4316_s17  ;;  %p46_p0 = scmp.ne.s32.totalorder %s4190_s30, %s4186_s29 }
  0x14   : > { %s36_s20 = sor.u32 %s34_s19, %s34_s19  ;;  %p47_p1 = scmp.eq.s32.totalorder %s4194_s14, 0 }
  0x15   : > { %p37_p2 = scmp.eq.s32.totalorder %s36_s20, 0  ;;  %p52_p3 = scmp.ne.s32.totalorder %s4186_s29, %s4182_s28 }
  0x16   : > { %p4325_p4 = por %p47_p1, %p46_p0  ;;  %p5162_p5 = scmp.eq.s32.totalorder %s4312_s15, 0 }
  0x17   : > { %s4331_s22 = scalar_select %p37_p2, %s4190_s30, %s39_s18  }
  0x18   : > { %s5189_s21 = scalar_select %p4325_p4, 1, 0 }
  0x19   : > { %5190 = sst [smem:[#allocation17_spill]] %s4331_s22  ;;  %p4335_p6 = por %p5162_p5, %p52_p3 }
  0x1a   : > { %p337_p7 = scmp.eq.s32.totalorder %s34_s19, 0  ;;  %s339_s24 = sadd.s32 1, %s4178_s27 }
  0x1b   : > { %s5191_s23 = scalar_select %p4335_p6, 1, 0 }
  0x1c   : > { %p349_p8 = scmp.ne.s32.totalorder %s4178_s27, %s4174_s26  ;;  %p350_p9 = scmp.eq.s32.totalorder %s4312_s15, 1 }
  0x1d   : > { %s4343_s17 = scalar_select %p337_p7, %s4178_s27, %s339_s24  }
  0x1e   : > { %p355_p10 = scmp.ne.s32.totalorder %s4174_s26, %s4170_s25  ;;  %p356_p11 = scmp.eq.s32.totalorder %s3034_s16, 1 }
  0x1f   : > { %5192 = sst [smem:[#allocation18_spill]] %s4343_s17  ;;  %p3035_p12 = scmp.ge.s32.totalorder %s4194_s14, 1 }
  0x20   : > { %p4349_p13 = por %p350_p9, %p349_p8  ;;  %p363_p0 = scmp.lt.s32.totalorder %s4194_s14, 3 }
  0x21   : > { %p4354_p1 = por %p356_p11, %p355_p10  ;;  %s4196_s20 = smov [#allocation6]  }
  0x22   : > { %s5193_s28 = scalar_select %p4349_p13, 1, 0 }
  0x23   : > { %s5195_s18 = scalar_select %p4354_p1, 1, 0 }
  0x24   : > { %5194 = sst [smem:[#allocation19_spill]] %s5193_s28  ;;  %p4358_p2 = pnand %p3035_p12, %p363_p0 }
  0x25   : > { %5196 = sst [smem:[#allocation20_spill]] %s5195_s18  ;;  %s387_s24 = sshll.u32 %s4196_s20, 4  ;;  %s388_s24 = int_to_ptr.vmem [resolvable:$true] %s387_s24 }
  0x26   : > { %s5197_s19 = scalar_select %p4358_p2, 1, 0 }
  0x27   : > { %p3810_p3 = pneg %p4358_p2  ;;  %s4197_s22 = smov [#allocation8]  }
  0x28   : > { %s403_s17 = sshll.u32 %s4197_s22, 4  ;;  %s5199_s9 = sld [smem:[#allocation33_spill]]  ;;  %s4370_s17 = int_to_ptr.vmem [resolvable:$true] %s403_s17 }
  0x29   : > { %p4366_p7 = pnand %p3810_p3, %p5162_p5 }
  0x2b   : > { %p4018_p9 = pneg %p4366_p7 }
  0x2e   : > { %s4016_s25 = scalar_lea.hbm %s5199_s9, 1024 }
  0x2f   : > { %p4017_p8 = scmp.ne.s32.totalorder %s5199_s9, %s4016_s25  ;;  %p4023_p12 = scmp.lt.u32.totalorder %s4016_s25, %s5199_s9 }
  0x31   : > { %p4019_p10 = pnand %p4018_p9, %p4017_p8 }
  0x33   : > { %p4020_p11 = pneg %p4019_p10 }
  0x35   : > { %p4025_p0 = pnand %p4023_p12, %p4020_p11 }
  0x37   : > { %4028 = shalt.err (!%p4025_p0)
}
  0x38   : > { %s4029_s22 = scalar_lea.vmem %s388_s24, 1024  ;;  %p4037_p13 = scmp.lt.s32.totalorder %s388_s24, %s388_s24 }
  0x39   : > { %p4030_p3 = scmp.ne.s32.totalorder %s388_s24, %s4029_s22  ;;  %p4038_p6 = scmp.lt.s32.totalorder %s4029_s22, %s4029_s22 }
  0x3b   : > { %p4032_p5 = pnand %p4030_p3, %p4018_p9  ;;  %p4039_p2 = por %p4038_p6, %p4037_p13 }
  0x3d   : > { %p4033_p1 = pneg %p4032_p5 }
  0x3f   : > { %p4040_p4 = pnand %p4039_p2, %p4033_p1 }
  0x41   : > { %4043 = shalt.err (!%p4040_p4)
}
  0x42   : > { %s4198_s13 = smov 64   ;;  %s4199_s27 = smov 4  }
  0x43   : > { %3813 = dma.hbm_to_vmem [thread:$0]  (!%p4366_p7), %s5199_s9, 1024, %s388_s24, [#allocation7], %s4198_s13, %s4198_s13, %s4199_s27  }
  0x44   : > { %s4044_s20 = scalar_lea.hbm %s5151_s11, 1024 }
  0x45   : > { %p4045_p5 = scmp.ne.s32.totalorder %s5151_s11, %s4044_s20  ;;  %p4051_p13 = scmp.lt.u32.totalorder %s4044_s20, %s5151_s11 }
  0x47   : > { %p4047_p4 = pnand %p4045_p5, %p4018_p9 }
  0x49   : > { %p4048_p6 = pneg %p4047_p4 }
  0x4b   : > { %p4053_p1 = pnand %p4051_p13, %p4048_p6 }
  0x4d   : > { %4056 = shalt.err (!%p4053_p1)
}
  0x4e   : > { %s4057_s24 = scalar_lea.vmem %s4370_s17, 1024  ;;  %p4065_p11 = scmp.lt.s32.totalorder %s4370_s17, %s4370_s17 }
  0x4f   : > { %p4058_p2 = scmp.ne.s32.totalorder %s4370_s17, %s4057_s24  ;;  %p4066_p12 = scmp.lt.s32.totalorder %s4057_s24, %s4057_s24 }
  0x51   : > { %p4060_p8 = pnand %p4058_p2, %p4018_p9  ;;  %p4067_p0 = por %p4066_p12, %p4065_p11 }
  0x53   : > { %p4061_p10 = pneg %p4060_p8 }
  0x55   : > { %p4068_p3 = pnand %p4067_p0, %p4061_p10 }
  0x57   : > { %4071 = shalt.err (!%p4068_p3)
}
  0x58   : > { %3816 = dma.hbm_to_vmem [thread:$0]  (!%p4366_p7), %s5151_s11, 1024, %s4370_s17, [#allocation7], %s4198_s13, %s4198_s13, %s4199_s27  }
  0x59   : > { %p3038_p5 = scmp.ge.s32.totalorder %s4194_s14, 2 }
  0x5a   : > { %s4423_s26 = sand.u32 (!%p3038_p5), 1, %s4190_s30   ;;  %s3041_s16 = sshll.u32 (!%p3038_p5), %s4194_s14, 1 }
  0x5b   : > { %416 = sbr.rel (%p3038_p5) target bundleno = 131 (0x83), region = 48  ;;  %s3039_s12 = sshll.u32 (!%p3038_p5), %s4423_s26, 8 }
  0x5c   : > { %s3161_s25 = sshll.u32 (!%p3038_p5), %s4194_s14, 7  ;;  %s424_s17 = scalar_lea.vmem (!%p3038_p5), [#allocation2], %s3039_s12 }
  0x5d   : > { %s431_s28 = sadd.s32 (!%p3038_p5), %s3161_s25, %s3041_s16  ;;  %s434_s13 = sshll.u32 (!%p3038_p5), %s424_s17, 4  ;;  %s4430_s13 = int_to_ptr.vmem [resolvable:$true] %s434_s13 }
  0x5e   : > { %s3043_s27 = sshll.u32 (!%p3038_p5), %s431_s28, 6  ;;  %s5200_s0 = sld [smem:[#allocation31_spill]] (!%p3038_p5) }
  0x5f   : > { %s421_s24 = scalar_lea.sflag (!%p3038_p5), [#allocation3], %s4423_s26  ;;  %p5201_p9 = scmp.ne.s32.totalorder (!%p3038_p5), %s5189_s21, 0 }
  0x64   : > { %s4435_s22 = scalar_lea.hbm %s5200_s0, %s3043_s27  ;;  %s4076_s25 = scalar_lea.hbm %s5200_s0, 16384 }
  0x65   : > { %s4072_s8 = scalar_lea.hbm %s4435_s22, 4096  ;;  %p4077_p13 = scmp.lt.u32.totalorder %s4435_s22, %s5200_s0 }
  0x66   : > { %p4073_p7 = scmp.ne.s32.totalorder %s4435_s22, %s4072_s8  ;;  %p4078_p1 = scmp.lt.u32.totalorder %s4076_s25, %s4072_s8 }
  0x67   : > { %p4080_p8 = scmp.lt.u32.totalorder %s4072_s8, %s4435_s22 }
  0x68   : > { %p4074_p4 = pnand %p4073_p7, %p5201_p9  ;;  %p4079_p2 = por %p4078_p1, %p4077_p13 }
  0x6a   : > { %p4075_p6 = pneg %p4074_p4  ;;  %p4081_p10 = por %p4080_p8, %p4079_p2 }
  0x6c   : > { %p4082_p11 = pnand %p4081_p10, %p4075_p6 }
  0x6e   : > { %4085 = shalt.err (!%p4082_p11)
}
  0x6f   : > { %s4086_s27 = scalar_lea.vmem %s4430_s13, 4096  ;;  %s4200_s18 = smov [#allocation2]  }
  0x70   : > { %p4087_p12 = scmp.ne.s32.totalorder %s4430_s13, %s4086_s27  ;;  %s4090_s20 = sshll.u32 %s4200_s18, 4  ;;  %s4091_s20 = int_to_ptr.vmem [resolvable:$false] %s4090_s20 }
  0x71   : > { %s4092_s10 = scalar_lea.vmem %s4091_s20, 8192  ;;  %p4093_p7 = scmp.lt.s32.totalorder %s4430_s13, %s4091_s20 }
  0x72   : > { %p4088_p0 = pnand %p4087_p12, %p5201_p9  ;;  %p4094_p4 = scmp.lt.s32.totalorder %s4092_s10, %s4086_s27 }
  0x74   : > { %p4089_p3 = pneg %p4088_p0  ;;  %p4095_p13 = por %p4094_p4, %p4093_p7 }
  0x76   : > { %p4096_p1 = pnand %p4095_p13, %p4089_p3 }
  0x78   : > { %4099 = shalt.err (!%p4096_p1)
}
  0x79   : > { %s4201_s8 = smov 256   ;;  %s4202_s12 = smov 128  }
  0x7a   : > { %s4203_s25 = smov 8   ;;  %452 = sbr.rel (!%p5201_p9) target bundleno = 131 (0x83), region = 60 }
  0x7b   : > { %3802 = dma.hbm_to_vmem [thread:$0]  (%p5201_p9), %s4435_s22, 4096, %s4430_s13, %s421_s24, %s4201_s8, %s4202_s12, %s4203_s25  }
  0x7c   : > { %s3044_s28 = sshll.u32 (%p5201_p9), %s4423_s26, 5  ;;  %s3162_s17 = sshll.u32 (%p5201_p9), %s4194_s14, 4 }
  0x7d   : > { %s460_s27 = sadd.s32 (%p5201_p9), %s3162_s17, %s3041_s16  ;;  %s456_s9 = scalar_lea.vmem (%p5201_p9), [#allocation5], %s3044_s28 }
  0x7e   : > { %s3048_s18 = sshll.u32 (%p5201_p9), %s460_s27, 2 }
  0x7f   : > { %s462_s0 = scalar_lea.vmem (%p5201_p9), %s5142_s2, %s3048_s18 }
  0x80   : > { %v496_v0 = vld [vmem:[%s462_s0] sm:$0xff] (%p5201_p9)  ;;  %v498_v1 = vld [vmem:[%s462_s0 + $0x10] sm:$0xff] (%p5201_p9) }
  0x81   : > { %v500_v2 = vld [vmem:[%s462_s0 + $0x20] sm:$0xff]  ;;  %497 = vst [vmem:[%s456_s9] sm:$0xff] %v496_v0  ;;  %499 = vst [vmem:[%s456_s9 + $0x8] sm:$0xff] %v498_v1  ;;  %v502_v3 = vld [vmem:[%s462_s0 + $0x30] sm:$0xff] }
  0x82   : > { %501 = vst [vmem:[%s456_s9 + $0x10] sm:$0xff] %v500_v2  ;;  %503 = vst [vmem:[%s456_s9 + $0x18] sm:$0xff] %v502_v3 }
  0x83 PF: > { %p5202_p9 = scmp.ne.s32.totalorder %s5197_s19, 0 }
  0x85   : > { %530 = sbr.rel (%p5202_p9) target bundleno = 1787 (0x6fb), region = 106 }
  0x8c   : > { %s532_s21 = sand.u32 1, %s4186_s29   ;;  %p5203_p6 = scmp.ne.s32.totalorder %s5191_s23, 0 }
  0x8d   : > { %s3050_s26 = sshll.u32 %s532_s21, 8  ;;  %s533_s16 = scalar_lea.sflag [#allocation3], %s532_s21 }
  0x8e   : > { %s4473_s13 = scalar_lea.vmem [#allocation2], %s3050_s26 }
  0x8f   : > { %4157 = dma.done.wait (%p5203_p6), %s533_s16, 4096  }
  0x90   : > { %4159 = vsyncadd (%p5203_p6), %s533_s16, 4294963200  ;;  %s3051_s0 = sshll.u32 %s532_s21, 5  ;;  %p5204_p2 = scmp.eq.s32.totalorder %s4312_s15, 0 }
  0x91   : > { %s4479_s9 = scalar_lea.vmem [#allocation5], %s3051_s0 }
  0x92   : > { %4161 = dma.done.wait (%p5204_p2), [#allocation7], 2048   ;;  %p5205_p8 = pmov %p5204_p2 }
  0x93   : > { %s3055_s19 = sshll.u32 %s4312_s15, 5  ;;  %v4204_v4 = vmov 0   ;;  %v4534_v16 = vld [vmem:[%s4473_s13 + $0x4] ss:$8 sps:$4 sm:$0xff]   ;;  %v3910_v26 = vld [vmem:[%s4473_s13] ss:$8 sps:$4 sm:$0xff]  }
  0x94   : > { %4163 = vsyncadd (%p5205_p8), [#allocation7], 4294965248  ;;  %p616_p10 = scmp.lt.s32.totalorder %s3055_s19, 63  ;;  %3892 = vset.pattern.permute.xlu0 %v4204_v4  ;;  %3893 = vset.pattern.permute.xlu1 %v4204_v4  ;;  %v3913_v27 = vld [vmem:[%s4473_s13 + $0x14] ss:$8 sps:$4 sm:$0xff]   ;;  %v3958_v42 = vld [vmem:[%s5146_s6] sm:$0xff]  }
  0x95   : > { %989 = vmatprep.mubr.bf16.mxu0 %v4534_v16  ;;  %v3915_v32 = vld [vmem:[%s4473_s13 + $0x10] ss:$8 sps:$4 sm:$0xff]   ;;  %v3916_v33 = vld [vmem:[%s4473_s13 + $0x24] ss:$8 sps:$4 sm:$0xff]   ;;  %v3918_v38 = vld [vmem:[%s4473_s13 + $0x20] ss:$8 sps:$4 sm:$0xff]   ;;  %3522 = vmatprep.subr.bf16.mxu1 %v3958_v42 }
  0x96   : > { %s5246_s19 = smov (!%p616_p10, %s3055_s19), 63  ;;  %v3919_v39 = vld [vmem:[%s4473_s13 + $0x34] ss:$8 sps:$4 sm:$0xff]   ;;  %v3959_v43 = vld [vmem:[%s5146_s6 + $0x8] sm:$0xff]   ;;  %v3921_v44 = vld [vmem:[%s4473_s13 + $0x30] ss:$8 sps:$4 sm:$0xff]   ;;  %3523 = vmatpush3.bf16.msra.mxu1 %v3958_v42 }
  0x97   : > { %s3060_s23 = sshll.u32 %s5246_s19, 2  ;;  %s3056_s12 = sshll.u32 %s5246_s19, 3  ;;  %3524 = vmatprep.subr.bf16.mxu1 %v3959_v43  ;;  %v3960_v47 = vld [vmem:[%s5146_s6 + $0x10] sm:$0xff]   ;;  %v3922_v48 = vld [vmem:[%s4473_s13 + $0x44] ss:$8 sps:$4 sm:$0xff]   ;;  %v3961_v51 = vld [vmem:[%s5146_s6 + $0x18] sm:$0xff]  }
  0x98   : > { %s4492_s8 = scalar_lea.vmem %s5144_s4, %s3060_s23  ;;  %s4553_s17 = scalar_lea.vmem %s5141_s1, %s3056_s12  ;;  %v3924_v53 = vld [vmem:[%s4473_s13 + $0x40] ss:$8 sps:$4 sm:$0xff]   ;;  %v3925_v55 = vld [vmem:[%s4473_s13 + $0x54] ss:$8 sps:$4 sm:$0xff]   ;;  %v3927_v62 = vld [vmem:[%s4473_s13 + $0x50] ss:$8 sps:$4 sm:$0xff]  }
  0x99   : > { %v4495_v5 = vld [vmem:[%s4492_s8 + $0x40] sm:$0xff]   ;;  %v4500_v7 = vld [vmem:[%s4492_s8 + $0x48] sm:$0xff]   ;;  %v4507_v9 = vld [vmem:[%s4492_s8 + $0x50] sm:$0xff]   ;;  %s3057_s16 = sshll.u32 %s4312_s15, 2  ;;  %s5228_s23 = sld [smem:[#allocation34_spill]] }
  0x9a   : > { %v3895_v6 = vld [vmem:[%s4492_s8] sm:$0xff]   ;;  %3164 = vmatprep.subr.bf16.mxu0 %v4495_v5  ;;  %v4503_v8 = vld [vmem:[%s4492_s8 + $0x8] sm:$0xff]   ;;  %v4511_v10 = vld [vmem:[%s4492_s8 + $0x10] sm:$0xff]   ;;  %3525 = vmatpush3.bf16.msra.mxu1 %v3959_v43  ;;  %p4610_p11 = scmp.lt.s32.totalorder %s3057_s16, 7  ;;  %s5230_s12 = sld [smem:[#allocation35_spill]] }
  0x9b   : > { %3165 = vmatpush3.bf16.msra.mxu0 %v3895_v6  ;;  %3538 = vmatprep.mubr.bf16.mxu1 %v3895_v6  ;;  %v4515_v11 = vld [vmem:[%s4492_s8 + $0x58] sm:$0xff]   ;;  %v4523_v13 = vld [vmem:[%s4492_s8 + $0x60] sm:$0xff]   ;;  %v4531_v15 = vld [vmem:[%s4492_s8 + $0x68] sm:$0xff]   ;;  %s3163_s28 = sshll.u32 %s4312_s15, 9  ;;  %s5231_s27 = sld [smem:[#allocation19_spill]] }
  0x9c   : > { %3166 = vmatprep.subr.bf16.mxu0 %v4500_v7  ;;  %v4519_v12 = vld [vmem:[%s4492_s8 + $0x18] sm:$0xff]   ;;  %v4527_v14 = vld [vmem:[%s4492_s8 + $0x20] sm:$0xff]   ;;  %v4538_v17 = vld [vmem:[%s4492_s8 + $0x28] sm:$0xff]   ;;  %3526 = vmatprep.subr.bf16.mxu1 %v3960_v47  ;;  %s5248_s16 = smov (!%p4610_p11, %s3057_s16), 7  ;;  %s5232_s10 = sld [smem:[#allocation36_spill]] }
  0x9d   : > { %v4543_v18 = vld [vmem:[%s4492_s8 + $0x70] sm:$0xff]   ;;  %v4557_v20 = vld [vmem:[%s4492_s8 + $0x78] sm:$0xff]   ;;  %v1118_v21 = vld [vmem:[%s4553_s17] sm:$0xff]  ;;  %s3058_s21 = sshll.u32 %s5248_s16, 3  ;;  %s4205_s0 = smov [#allocation9]  }
  0x9e   : > { %v4548_v19 = vld [vmem:[%s4492_s8 + $0x30] sm:$0xff]   ;;  %v4562_v22 = vld [vmem:[%s4492_s8 + $0x38] sm:$0xff]   ;;  %1152 = vperm.xlu0 %3892, %v1118_v21   ;;  %v1119_v24 = vld [vmem:[%s4553_s17 + $0x8] sm:$0xff]  ;;  %3527 = vmatpush3.bf16.msra.mxu1 %v3960_v47  ;;  %s627_s22 = scalar_lea.vmem %s5143_s3, %s3058_s21  ;;  %s4104_s19 = sshll.u32 %s4205_s0, 4  ;;  %s4105_s19 = int_to_ptr.vmem [resolvable:$false] %s4104_s19 }
  0x9f   : > { %3167 = vmatpush3.bf16.msra.mxu0 %v4503_v8  ;;  %v1120_v23 = vld [vmem:[%s4553_s17 + $0x10] sm:$0xff]  ;;  %v1121_v25 = vld [vmem:[%s4553_s17 + $0x18] sm:$0xff]  ;;  %v1122_v28 = vld [vmem:[%s4553_s17 + $0x20] sm:$0xff]  ;;  %3528 = vmatprep.subr.bf16.mxu1 %v3961_v51 }
  0xa0   : > { %3168 = vmatprep.subr.bf16.mxu0 %v4507_v9  ;;  %1162 = vperm.xlu1 %3893, %v1120_v23   ;;  %v1123_v29 = vld [vmem:[%s4553_s17 + $0x28] sm:$0xff]  ;;  %v1124_v30 = vld [vmem:[%s4553_s17 + $0x30] sm:$0xff]  ;;  %v1125_v31 = vld [vmem:[%s4553_s17 + $0x38] sm:$0xff] }
  0xa1   : > { %v1126_v34 = vld [vmem:[%s4553_s17 + $0x40] sm:$0xff]  ;;  %v1127_v35 = vld [vmem:[%s4553_s17 + $0x48] sm:$0xff]  ;;  %v1128_v36 = vld [vmem:[%s4553_s17 + $0x50] sm:$0xff]  ;;  %p5233_p0 = scmp.ne.s32.totalorder %s5231_s27, 0 }
  0xa2   : > { %1157 = vperm.xlu0 %3892, %v1119_v24   ;;  %v1129_v37 = vld [vmem:[%s4553_s17 + $0x58] sm:$0xff]  ;;  %v1130_v40 = vld [vmem:[%s4553_s17 + $0x60] sm:$0xff]  ;;  %v1131_v41 = vld [vmem:[%s4553_s17 + $0x68] sm:$0xff]  ;;  %3529 = vmatpush3.bf16.msra.mxu1 %v3961_v51  ;;  %s5087_s21 = scalar_lea.hbm %s5232_s10, %s3163_s28 }
  0xa3   : > { %3169 = vmatpush3.bf16.msra.mxu0 %v4511_v10  ;;  %v1132_v45 = vld [vmem:[%s4553_s17 + $0x70] sm:$0xff]  ;;  %v1133_v46 = vld [vmem:[%s4553_s17 + $0x78] sm:$0xff]  ;;  %v1134_v49 = vld [vmem:[%s4553_s17 + $0x80] sm:$0xff] }
  0xa4   : > { %3170 = vmatprep.subr.bf16.mxu0 %v4515_v11  ;;  %1167 = vperm.xlu1 %3893, %v1121_v25   ;;  %v1135_v50 = vld [vmem:[%s4553_s17 + $0x88] sm:$0xff]  ;;  %v1136_v52 = vld [vmem:[%s4553_s17 + $0x90] sm:$0xff]  ;;  %v1137_v54 = vld [vmem:[%s4553_s17 + $0x98] sm:$0xff] }
  0xa5   : > { %v3962_v56 = vld [vmem:[%s5146_s6 + $0x20] sm:$0xff]   ;;  %v1139_v58 = vld [vmem:[%s4553_s17 + $0xa8] sm:$0xff]  ;;  %v1140_v60 = vld [vmem:[%s4553_s17 + $0xb0] sm:$0xff] }
  0xa6   : > { %1172 = vperm.xlu0 %3892, %v1122_v28   ;;  %v1138_v57 = vld [vmem:[%s4553_s17 + $0xa0] sm:$0xff]  ;;  %v3963_v59 = vld [vmem:[%s5146_s6 + $0x28] sm:$0xff]   ;;  %3530 = vmatprep.subr.bf16.mxu1 %v3962_v56  ;;  %v1141_v61 = vld [vmem:[%s4553_s17 + $0xb8] sm:$0xff] }
  0xa7   : > { %3171 = vmatpush3.bf16.msra.mxu0 %v4519_v12  ;;  %v3964_v63 = vld [vmem:[%s5146_s6 + $0x30] sm:$0xff]   ;;  %v3928_v0 = vld [vmem:[%s4473_s13 + $0x64] ss:$8 sps:$4 sm:$0xff]   ;;  %3531 = vmatpush3.bf16.msra.mxu1 %v3962_v56  ;;  %v3965_v3 = vld [vmem:[%s5146_s6 + $0x38] sm:$0xff]  }
  0xa8   : > { %3172 = vmatprep.subr.bf16.mxu0 %v4523_v13  ;;  %1177 = vperm.xlu1 %3893, %v1123_v29   ;;  %v1142_v1 = vld [vmem:[%s4553_s17 + $0xc0] sm:$0xff]  ;;  %v1143_v2 = vld [vmem:[%s4553_s17 + $0xc8] sm:$0xff]  ;;  %v1144_v4 = vld [vmem:[%s4553_s17 + $0xd0] sm:$0xff] }
  0xa9   : > { %3532 = vmatprep.subr.bf16.mxu1 %v3963_v59  ;;  %v1145_v6 = vld [vmem:[%s4553_s17 + $0xd8] sm:$0xff]  ;;  %v4641_v21 = vld [vmem:[%s4473_s13 + $0x60] ss:$8 sps:$4 sm:$0xff]   ;;  %v1148_v28 = vld [vmem:[%s4553_s17 + $0xf0] sm:$0xff] }
  0xaa   : > { %1182 = vperm.xlu0 %3892, %v1124_v30   ;;  %v3966_v23 = vld [vmem:[%s5145_s5] sm:$0xff]   ;;  %v4647_v24 = vld [vmem:[%s4473_s13 + $0x74] ss:$8 sps:$4 sm:$0xff]   ;;  %v4664_v30 = vld [vmem:[%s4473_s13 + $0x70] ss:$8 sps:$4 sm:$0xff]  }
  0xab   : > { %3173 = vmatpush3.bf16.msra.mxu0 %v4527_v14  ;;  %3533 = vmatpush3.bf16.msra.mxu1 %v3963_v59  ;;  %v1146_v25 = vld [vmem:[%s4553_s17 + $0xe0] sm:$0xff]  ;;  %v1149_v29 = vld [vmem:[%s4553_s17 + $0xf8] sm:$0xff] }
  0xac   : > { %3174 = vmatprep.subr.bf16.mxu0 %v4531_v15  ;;  %1187 = vperm.xlu1 %3893, %v1125_v31   ;;  %v3968_v31 = vld [vmem:[%s5145_s5 + $0x10] sm:$0xff]   ;;  %v4751_v42 = vld [vmem:[%s4473_s13 + $0xe0] ss:$8 sps:$4 sm:$0xff]  }
  0xad   : > { %3534 = vmatprep.subr.bf16.mxu1 %v3964_v63  ;;  %v4754_v43 = vld [vmem:[%s4473_s13 + $0xf4] ss:$8 sps:$4 sm:$0xff]   ;;  %v3974_v47 = vld [vmem:[#allocation6] sm:$0xff]  }
  0xae   : > { %1192 = vperm.xlu0 %3892, %v1126_v34   ;;  %v2716_v34 = vld [vmem:[%s627_s22 + $0x10] sm:$0xff] }
  0xaf   : > { %3175 = vmatpush3.bf16.msra.mxu0 %v4538_v17  ;;  %3535 = vmatpush3.bf16.msra.mxu1 %v3964_v63 }
  0xb0   : > { %3176 = vmatprep.subr.bf16.mxu0 %v4543_v18  ;;  %1197 = vperm.xlu1 %3893, %v1127_v35   ;;  %v2717_v35 = vld [vmem:[%s627_s22 + $0x18] sm:$0xff] }
  0xb1   : > { %3536 = vmatprep.subr.bf16.mxu1 %v3965_v3 }
  0xb2   : > { %1202 = vperm.xlu0 %3892, %v1128_v36   ;;  %v4680_v36 = vld [vmem:[%s4473_s13 + $0x80] ss:$8 sps:$4 sm:$0xff]  }
  0xb3   : > { %3177 = vmatpush3.bf16.msra.mxu0 %v4548_v19  ;;  %3537 = vmatpush3.bf16.msra.mxu1 %v3965_v3 }
  0xb4   : > { %3178 = vmatprep.subr.bf16.mxu0 %v4557_v20  ;;  %1207 = vperm.xlu1 %3893, %v1129_v37   ;;  %v4683_v37 = vld [vmem:[%s4473_s13 + $0x94] ss:$8 sps:$4 sm:$0xff]  }
  0xb5   : > { %3570 = vmatprep.subr.bf16.mxu1 %v3966_v23 }
  0xb6   : > { %1212 = vperm.xlu0 %3892, %v1130_v40   ;;  %3539 = vmatmul.mubr.bf16.vlgmr.msra.gmra.mrb[0].mxu1 %v4503_v8  ;;  %v2714_v8 = vld [vmem:[%s627_s22] sm:$0xff]  ;;  %v4732_v40 = vld [vmem:[%s4473_s13 + $0xd4] ss:$8 sps:$4 sm:$0xff]  }
  0xb7   : > { %3179 = vmatpush3.bf16.msra.mxu0 %v4562_v22  ;;  %3542 = vmatprep.mubr.bf16.mxu1 %v4511_v10  ;;  %v3969_v10 = vld [vmem:[%s5145_s5 + $0x18] sm:$0xff]  }
  0xb8   : > { %1217 = vperm.xlu1 %3893, %v1131_v41   ;;  %3571 = vmatpush3.bf16.msra.mxu1 %v3966_v23  ;;  %v4745_v41 = vld [vmem:[%s4473_s13 + $0xe4] ss:$8 sps:$4 sm:$0xff]  }
  0xba   : > { %990 = vmatmul.mubr.bf16.vlgmr.msra.gmra.mrb[0].mxu0 %v3910_v26  ;;  %1222 = vperm.xlu0 %3892, %v1132_v45   ;;  %v1147_v26 = vld [vmem:[%s4553_s17 + $0xe8] sm:$0xff] }
  0xbb   : > { %997 = vmatprep.mubr.bf16.mxu0 %v3913_v27  ;;  %v3967_v27 = vld [vmem:[%s5145_s5 + $0x8] sm:$0xff]  }
  0xbc   : > { %1227 = vperm.xlu1 %3893, %v1133_v46   ;;  %3572 = vmatprep.subr.bf16.mxu1 %v3967_v27 }
  0xbd   : > { %3573 = vmatpush3.bf16.msra.mxu1 %v3967_v27 }
  0xbe   : > { %1232 = vperm.xlu0 %3892, %v1134_v49   ;;  %3574 = vmatprep.subr.bf16.mxu1 %v3968_v31 }
  0xbf   : > { %3543 = vmatmul.mubr.bf16.gmra.mrb[4].mxu1 %v4519_v12  ;;  %v4690_v12 = vld [vmem:[%s4473_s13 + $0x90] ss:$8 sps:$4 sm:$0xff]  }
  0xc0   : > { %1237 = vperm.xlu1 %3893, %v1135_v50   ;;  %3546 = vmatprep.mubr.bf16.mxu1 %v4527_v14  ;;  %v4693_v14 = vld [vmem:[%s4473_s13 + $0xa4] ss:$8 sps:$4 sm:$0xff]  }
  0xc1   : > { %3575 = vmatpush3.bf16.msra.mxu1 %v3968_v31 }
  0xc2   : > { %998 = vmatmul.mubr.bf16.gmra.mrb[4].mxu0 %v3915_v32  ;;  %1242 = vperm.xlu0 %3892, %v1136_v52   ;;  %v4670_v32 = vld [vmem:[%s4473_s13 + $0x84] ss:$8 sps:$4 sm:$0xff]  }
  0xc3   : > { %1005 = vmatprep.mubr.bf16.mxu0 %v3916_v33  ;;  %v2715_v33 = vld [vmem:[%s627_s22 + $0x8] sm:$0xff]  ;;  %3576 = vmatprep.subr.bf16.mxu1 %v3969_v10  ;;  %s5217_s22 = sld [smem:[#allocation32_spill]] }
  0xc4   : > { %1247 = vperm.xlu1 %3893, %v1137_v54  }
  0xc5   : > { %3577 = vmatpush3.bf16.msra.mxu1 %v3969_v10 }
  0xc6   : > { %1252 = vperm.xlu0 %3892, %v1138_v57  }
  0xc7   : > { %3547 = vmatmul.mubr.bf16.gmra.mrb[8].mxu1 %v4538_v17  ;;  %v3970_v17 = vld [vmem:[%s5145_s5 + $0x20] sm:$0xff]  }
  0xc8   : > { %1257 = vperm.xlu1 %3893, %v1139_v58   ;;  %3550 = vmatprep.mubr.bf16.mxu1 %v4548_v19  ;;  %v4713_v19 = vld [vmem:[%s4473_s13 + $0xb0] ss:$8 sps:$4 sm:$0xff]  }
  0xc9   : > { %3578 = vmatprep.subr.bf16.mxu1 %v3970_v17 }
  0xca   : > { %1006 = vmatmul.mubr.bf16.gmra.mrb[8].mxu0 %v3918_v38  ;;  %1262 = vperm.xlu0 %3892, %v1140_v60   ;;  %v4700_v38 = vld [vmem:[%s4473_s13 + $0xa0] ss:$8 sps:$4 sm:$0xff]  }
  0xcb   : > { %1013 = vmatprep.mubr.bf16.mxu0 %v3919_v39  ;;  %v4703_v39 = vld [vmem:[%s4473_s13 + $0xb4] ss:$8 sps:$4 sm:$0xff]   ;;  %3579 = vmatpush3.bf16.msra.mxu1 %v3970_v17 }
  0xcc   : > { %1267 = vperm.xlu1 %3893, %v1141_v61  }
  0xce   : > { %1272 = vperm.xlu0 %3892, %v1142_v1   ;;  %v3975_v1 = vld [vmem:[#allocation6 + $0x8] sm:$0xff]  }
  0xcf   : > { %3551 = vmatmul.mubr.bf16.gmra.mrb[12].mxu1 %v4562_v22  ;;  %v3971_v22 = vld [vmem:[%s5145_s5 + $0x28] sm:$0xff]  }
  0xd0   : > { %1277 = vperm.xlu1 %3893, %v1143_v2   ;;  %3554 = vmatprep.mubr.bf16.mxu1 %v4495_v5  ;;  %v4716_v5 = vld [vmem:[%s4473_s13 + $0xc4] ss:$8 sps:$4 sm:$0xff]  }
  0xd1   : > { %3580 = vmatprep.subr.bf16.mxu1 %v3971_v22 }
  0xd2   : > { %1014 = vmatmul.mubr.bf16.gmra.mrb[12].mxu0 %v3921_v44  ;;  %1282 = vperm.xlu0 %3892, %v1144_v4  }
  0xd3   : > { %1021 = vmatprep.mubr.bf16.mxu0 %v3922_v48  ;;  %3581 = vmatpush3.bf16.msra.mxu1 %v3971_v22 }
  0xd4   : > { %1287 = vperm.xlu1 %3893, %v1145_v6  }
  0xd6   : > { %1292 = vperm.xlu0 %3892, %v1146_v25   ;;  %v3976_v25 = vld [vmem:[#allocation6 + $0x10] sm:$0xff]  }
  0xd7   : > { %3555 = vmatmul.mubr.bf16.gmra.mrb[16].mxu1 %v4500_v7  ;;  %v3972_v7 = vld [vmem:[%s5145_s5 + $0x30] sm:$0xff]  }
  0xd8   : > { %1297 = vperm.xlu1 %3893, %v1147_v26   ;;  %3558 = vmatprep.mubr.bf16.mxu1 %v4507_v9  ;;  %v4729_v9 = vld [vmem:[%s4473_s13 + $0xc0] ss:$8 sps:$4 sm:$0xff]  }
  0xd9   : > { %3582 = vmatprep.subr.bf16.mxu1 %v3972_v7 }
  0xda   : > { %1022 = vmatmul.mubr.bf16.gmra.mrb[16].mxu0 %v3924_v53  ;;  %1302 = vperm.xlu0 %3892, %v1148_v28  }
  0xdb   : > { %1029 = vmatprep.mubr.bf16.mxu0 %v3925_v55  ;;  %3583 = vmatpush3.bf16.msra.mxu1 %v3972_v7  ;;  %v3978_v7 = vld [vmem:[#allocation6 + $0x20] sm:$0xff]  }
  0xdc   : > { %1307 = vperm.xlu1 %3893, %v1149_v29  }
  0xde   : > { %2720 = vperm.xlu0 %3892, %v2714_v8  }
  0xdf   : > { %3559 = vmatmul.mubr.bf16.gmra.mrb[20].mxu1 %v4515_v11  ;;  %v3973_v11 = vld [vmem:[%s5145_s5 + $0x38] sm:$0xff]  }
  0xe0   : > { %2725 = vperm.xlu1 %3893, %v2715_v33   ;;  %3562 = vmatprep.mubr.bf16.mxu1 %v4523_v13  ;;  %v4742_v13 = vld [vmem:[%s4473_s13 + $0xd0] ss:$8 sps:$4 sm:$0xff]  }
  0xe1   : > { %3584 = vmatprep.subr.bf16.mxu1 %v3973_v11  ;;  %v3977_v33 = vld [vmem:[#allocation6 + $0x18] sm:$0xff]  }
  0xe2   : > { %1030 = vmatmul.mubr.bf16.gmra.mrb[20].mxu0 %v3927_v62  ;;  %2730 = vperm.xlu0 %3892, %v2716_v34  }
  0xe3   : > { %1037 = vmatprep.mubr.bf16.mxu0 %v3928_v0  ;;  %3585 = vmatpush3.bf16.msra.mxu1 %v3973_v11 }
  0xe4   : > { %2735 = vperm.xlu1 %3893, %v2717_v35   ;;  %3618 = vmatprep.subr.bf16.mxu1 %v3974_v47 }
  0xe7   : > { %3563 = vmatmul.mubr.bf16.gmra.mrb[24].mxu1 %v4531_v15  ;;  %v4759_v15 = vld [vmem:[%s4473_s13 + $0xf0] ss:$8 sps:$4 sm:$0xff]  }
  0xe8   : > { %3566 = vmatprep.mubr.bf16.mxu1 %v4543_v18 }
  0xea   : > { %1038 = vmatmul.mubr.bf16.gmra.mrb[24].mxu0 %v4641_v21 }
  0xeb   : > { %1045 = vmatprep.mubr.bf16.mxu0 %v4647_v24 }
  0xef   : > { %3567 = vmatmul.mubr.bf16.gmra.mrb[28].mxu1 %v4557_v20 }
  0xf2   : > { %1046 = vmatmul.mubr.bf16.gmra.mrb[28].mxu0 %v4664_v30 }
  0xf3   : > { %1053 = vmatprep.mubr.bf16.mxu0 %v4670_v32 }
  0xfa   : > { %1054 = vmatmul.mubr.bf16.gmra.mrb[32].mxu0 %v4680_v36 }
  0xfb   : > { %1061 = vmatprep.mubr.bf16.mxu0 %v4683_v37 }
 0x102   : > { %1062 = vmatmul.mubr.bf16.gmra.mrb[36].mxu0 %v4690_v12 }
 0x103   : > { %1069 = vmatprep.mubr.bf16.mxu0 %v4693_v14 }
 0x10a   : > { %1070 = vmatmul.mubr.bf16.gmra.mrb[40].mxu0 %v4700_v38 }
 0x10b   : > { %1077 = vmatprep.mubr.bf16.mxu0 %v4703_v39 }
 0x112   : > { %1078 = vmatmul.mubr.bf16.gmra.mrb[44].mxu0 %v4713_v19 }
 0x113   : > { %1085 = vmatprep.mubr.bf16.mxu0 %v4716_v5 }
 0x11a   : > { %1086 = vmatmul.mubr.bf16.gmra.mrb[48].mxu0 %v4729_v9 }
 0x11b   : > { %1093 = vmatprep.mubr.bf16.mxu0 %v4732_v40 }
 0x11d   : > { %v4763_v18 = vpop.permute.xlu0 %1152 }
 0x11f   : > { %v4769_v53 = vpop.permute.xlu1 %1162 }
 0x121   : > { %v4765_v50 = vpop.permute.xlu0 %1157 }
 0x122   : > { %1094 = vmatmul.mubr.bf16.gmra.mrb[52].mxu0 %v4742_v13 }
 0x123   : > { %1101 = vmatprep.mubr.bf16.mxu0 %v4745_v41  ;;  %v4771_v60 = vpop.permute.xlu1 %1167 }
 0x125   : > { %v4775_v26 = vpop.permute.xlu0 %1172 }
 0x127   : > { %v4777_v27 = vpop.permute.xlu1 %1177 }
 0x129   : > { %v4781_v11 = vpop.permute.xlu0 %1182 }
 0x12a   : > { %1102 = vmatmul.mubr.bf16.gmra.mrb[56].mxu0 %v4751_v42 }
 0x12b   : > { %1109 = vmatprep.mubr.bf16.mxu0 %v4754_v43 }
 0x132   : > { %1110 = vmatmul.mubr.bf16.gmra.mrb[60].mxu0 %v4759_v15 }
 0x133   : > { %1927 = vmatprep.mubr.bf16.mxu0 %v4534_v16 }
 0x18d   : > { %v3180_v44 = vpop.f32.mrb[0].mxu0 }
 0x18e   : > { %v3181_v45 = vpop.f32.mrb[1].mxu0 }
 0x18f   : > { %v3182_v46 = vadd.f32 %v3181_v45, %v3180_v44  ;;  %v3183_v20 = vpop.f32.mrb[2].mxu0  ;;  %v4783_v44 = vpop.permute.xlu1 %1187 }
 0x190   : > { %v3184_v48 = vpop.f32.mrb[3].mxu0 }
 0x191   : > { %v3185_v49 = vadd.f32 %v3184_v48, %v3183_v20  ;;  %v1310_v51 = vmul.f32 %v3182_v46, %v4763_v18  ;;  %v3979_v48 = vld [vmem:[#allocation6 + $0x28] sm:$0xff]  }
 0x193   : > { %v1311_v52 = vmul.f32 %v3185_v49, %v4765_v50 }
 0x195   : > { %v3186_v54 = vpop.f32.mrb[4].mxu0  ;;  %v1342_v16 = vpack.c.bf16 %v1311_v52, %v1310_v51 }
 0x196   : > { %v3187_v55 = vpop.f32.mrb[5].mxu0 }
 0x197   : > { %v3188_v56 = vadd.f32 %v3187_v55, %v3186_v54  ;;  %v3189_v57 = vpop.f32.mrb[6].mxu0  ;;  %3586 = vmatprep.mubr.bf16.mxu1 %v1342_v16  ;;  %v4787_v55 = vpop.permute.xlu0 %1192 }
 0x198   : > { %v3190_v58 = vpop.f32.mrb[7].mxu0 }
 0x199   : > { %v3191_v59 = vadd.f32 %v3190_v58, %v3189_v57  ;;  %v1312_v61 = vmul.f32 %v3188_v56, %v4769_v53  ;;  %v4789_v56 = vpop.permute.xlu1 %1197 }
 0x19b   : > { %v1313_v62 = vmul.f32 %v3191_v59, %v4771_v60 }
 0x19d   : > { %v1343_v63 = vpack.c.bf16 %v1313_v62, %v1312_v61  ;;  %v3192_v0 = vpop.f32.mrb[8].mxu0 }
 0x19e   : > { %v3193_v2 = vpop.f32.mrb[9].mxu0 }
 0x19f   : > { %v3194_v3 = vadd.f32 %v3193_v2, %v3192_v0  ;;  %v3195_v4 = vpop.f32.mrb[10].mxu0  ;;  %3587 = vmatmul.mubr.bf16.vlgmr.msra.gmra.mrb[0].mxu1 %v1343_v63 }
 0x1a0   : > { %v3196_v6 = vpop.f32.mrb[11].mxu0  ;;  %3619 = vmatpush3.bf16.msra.mxu1 %v3974_v47 }
 0x1a1   : > { %v3197_v23 = vadd.f32 %v3196_v6, %v3195_v4  ;;  %3620 = vmatprep.subr.bf16.mxu1 %v3975_v1  ;;  %v1314_v28 = vmul.f32 %v3194_v3, %v4775_v26  ;;  %v4793_v3 = vpop.permute.xlu0 %1202  ;;  %v4795_v4 = vpop.permute.xlu1 %1207 }
 0x1a3   : > { %v1315_v29 = vmul.f32 %v3197_v23, %v4777_v27 }
 0x1a4   : > { %3621 = vmatpush3.bf16.msra.mxu1 %v3975_v1 }
 0x1a5   : > { %v3198_v31 = vpop.f32.mrb[12].mxu0  ;;  %v1344_v8 = vpack.c.bf16 %v1315_v29, %v1314_v28  ;;  %3622 = vmatprep.subr.bf16.mxu1 %v3976_v25 }
 0x1a6   : > { %v3199_v10 = vpop.f32.mrb[13].mxu0 }
 0x1a7   : > { %v3200_v34 = vadd.f32 %v3199_v10, %v3198_v31  ;;  %v3201_v35 = vpop.f32.mrb[14].mxu0  ;;  %3590 = vmatprep.mubr.bf16.mxu1 %v1344_v8 }
 0x1a8   : > { %v3202_v17 = vpop.f32.mrb[15].mxu0  ;;  %3623 = vmatpush3.bf16.msra.mxu1 %v3976_v25 }
 0x1a9   : > { %v3203_v22 = vadd.f32 %v3202_v17, %v3201_v35  ;;  %3624 = vmatprep.subr.bf16.mxu1 %v3977_v33  ;;  %v1316_v45 = vmul.f32 %v3200_v34, %v4781_v11  ;;  %v4799_v34 = vpop.permute.xlu0 %1212  ;;  %v4801_v35 = vpop.permute.xlu1 %1217 }
 0x1ab   : > { %v1317_v46 = vmul.f32 %v3203_v22, %v4783_v44 }
 0x1ac   : > { %3625 = vmatpush3.bf16.msra.mxu1 %v3977_v33 }
 0x1ad   : > { %v3204_v20 = vpop.f32.mrb[16].mxu0  ;;  %v1345_v47 = vpack.c.bf16 %v1317_v46, %v1316_v45  ;;  %3626 = vmatprep.subr.bf16.mxu1 %v3978_v7 }
 0x1ae   : > { %v3205_v49 = vpop.f32.mrb[17].mxu0 }
 0x1af   : > { %v3206_v51 = vadd.f32 %v3205_v49, %v3204_v20  ;;  %v3207_v52 = vpop.f32.mrb[18].mxu0  ;;  %3591 = vmatmul.mubr.bf16.gmra.mrb[4].mxu1 %v1345_v47 }
 0x1b0   : > { %v3208_v54 = vpop.f32.mrb[19].mxu0  ;;  %3627 = vmatpush3.bf16.msra.mxu1 %v3978_v7 }
 0x1b1   : > { %v3209_v16 = vadd.f32 %v3208_v54, %v3207_v52  ;;  %3628 = vmatprep.subr.bf16.mxu1 %v3979_v48  ;;  %v1318_v57 = vmul.f32 %v3206_v51, %v4787_v55  ;;  %v4805_v51 = vpop.permute.xlu0 %1222  ;;  %v4807_v52 = vpop.permute.xlu1 %1227 }
 0x1b3   : > { %v1319_v58 = vmul.f32 %v3209_v16, %v4789_v56 }
 0x1b4   : > { %3629 = vmatpush3.bf16.msra.mxu1 %v3979_v48 }
 0x1b5   : > { %v3210_v59 = vpop.f32.mrb[20].mxu0  ;;  %v1346_v61 = vpack.c.bf16 %v1319_v58, %v1318_v57 }
 0x1b6   : > { %v3211_v62 = vpop.f32.mrb[21].mxu0 }
 0x1b7   : > { %v3212_v63 = vadd.f32 %v3211_v62, %v3210_v59  ;;  %v3213_v0 = vpop.f32.mrb[22].mxu0  ;;  %3594 = vmatprep.mubr.bf16.mxu1 %v1346_v61 }
 0x1b8   : > { %v3214_v1 = vpop.f32.mrb[23].mxu0 }
 0x1b9   : > { %v3215_v2 = vadd.f32 %v3214_v1, %v3213_v0  ;;  %v1320_v6 = vmul.f32 %v3212_v63, %v4793_v3  ;;  %v4811_v1 = vpop.permute.xlu0 %1232 }
 0x1bb   : > { %v1321_v23 = vmul.f32 %v3215_v2, %v4795_v4  ;;  %v4813_v2 = vpop.permute.xlu1 %1237 }
 0x1bd   : > { %v3216_v25 = vpop.f32.mrb[24].mxu0  ;;  %v1347_v28 = vpack.c.bf16 %v1321_v23, %v1320_v6 }
 0x1be   : > { %v3217_v29 = vpop.f32.mrb[25].mxu0 }
 0x1bf   : > { %v3218_v31 = vadd.f32 %v3217_v29, %v3216_v25  ;;  %v3219_v8 = vpop.f32.mrb[26].mxu0  ;;  %3595 = vmatmul.mubr.bf16.gmra.mrb[8].mxu1 %v1347_v28 }
 0x1c0   : > { %v3220_v33 = vpop.f32.mrb[27].mxu0 }
 0x1c1   : > { %v3221_v10 = vadd.f32 %v3220_v33, %v3219_v8  ;;  %v1322_v17 = vmul.f32 %v3218_v31, %v4799_v34 }
 0x1c3   : > { %v1323_v22 = vmul.f32 %v3221_v10, %v4801_v35 }
 0x1c5   : > { %v3222_v7 = vpop.f32.mrb[28].mxu0  ;;  %v1348_v45 = vpack.c.bf16 %v1323_v22, %v1322_v17  ;;  %v4817_v17 = vpop.permute.xlu0 %1242 }
 0x1c6   : > { %v3223_v46 = vpop.f32.mrb[29].mxu0  ;;  %v4819_v22 = vpop.permute.xlu1 %1247 }
 0x1c7   : > { %v3224_v20 = vadd.f32 %v3223_v46, %v3222_v7  ;;  %v3225_v47 = vpop.f32.mrb[30].mxu0  ;;  %3598 = vmatprep.mubr.bf16.mxu1 %v1348_v45 }
 0x1c8   : > { %v3226_v48 = vpop.f32.mrb[31].mxu0 }
 0x1c9   : > { %v3227_v49 = vadd.f32 %v3226_v48, %v3225_v47  ;;  %v1324_v54 = vmul.f32 %v3224_v20, %v4805_v51 }
 0x1cb   : > { %v1325_v16 = vmul.f32 %v3227_v49, %v4807_v52 }
 0x1cd   : > { %v3228_v57 = vpop.f32.mrb[32].mxu0  ;;  %v1349_v58 = vpack.c.bf16 %v1325_v16, %v1324_v54 }
 0x1ce   : > { %v3229_v59 = vpop.f32.mrb[33].mxu0 }
 0x1cf   : > { %v3230_v61 = vadd.f32 %v3229_v59, %v3228_v57  ;;  %v3231_v62 = vpop.f32.mrb[34].mxu0  ;;  %3599 = vmatmul.mubr.bf16.gmra.mrb[12].mxu1 %v1349_v58  ;;  %v4823_v57 = vpop.permute.xlu0 %1252 }
 0x1d0   : > { %v3232_v63 = vpop.f32.mrb[35].mxu0  ;;  %v4825_v58 = vpop.permute.xlu1 %1257 }
 0x1d1   : > { %v3233_v0 = vadd.f32 %v3232_v63, %v3231_v62  ;;  %v1326_v6 = vmul.f32 %v3230_v61, %v4811_v1 }
 0x1d3   : > { %v1327_v23 = vmul.f32 %v3233_v0, %v4813_v2 }
 0x1d5   : > { %v3234_v25 = vpop.f32.mrb[36].mxu0  ;;  %v1350_v28 = vpack.c.bf16 %v1327_v23, %v1326_v6 }
 0x1d6   : > { %v3235_v29 = vpop.f32.mrb[37].mxu0 }
 0x1d7   : > { %v3236_v31 = vadd.f32 %v3235_v29, %v3234_v25  ;;  %v3237_v8 = vpop.f32.mrb[38].mxu0  ;;  %3602 = vmatprep.mubr.bf16.mxu1 %v1350_v28  ;;  %v4829_v29 = vpop.permute.xlu0 %1262 }
 0x1d8   : > { %v3238_v33 = vpop.f32.mrb[39].mxu0  ;;  %5207 = vst [vmem:[#allocation21_spill] sm:$0xff] %v4829_v29 }
 0x1d9   : > { %v3239_v10 = vadd.f32 %v3238_v33, %v3237_v8  ;;  %v1328_v7 = vmul.f32 %v3236_v31, %v4817_v17  ;;  %v4831_v31 = vpop.permute.xlu1 %1267 }
 0x1da   : > { %5208 = vst [vmem:[#allocation22_spill] sm:$0xff] %v4831_v31 }
 0x1db   : > { %v1329_v45 = vmul.f32 %v3239_v10, %v4819_v22 }
 0x1dd   : > { %v3240_v46 = vpop.f32.mrb[40].mxu0  ;;  %v1351_v20 = vpack.c.bf16 %v1329_v45, %v1328_v7 }
 0x1de   : > { %v3241_v47 = vpop.f32.mrb[41].mxu0 }
 0x1df   : > { %v3242_v48 = vadd.f32 %v3241_v47, %v3240_v46  ;;  %v3243_v49 = vpop.f32.mrb[42].mxu0  ;;  %3603 = vmatmul.mubr.bf16.gmra.mrb[16].mxu1 %v1351_v20 }
 0x1e0   : > { %v3244_v54 = vpop.f32.mrb[43].mxu0 }
 0x1e1   : > { %v3245_v16 = vadd.f32 %v3244_v54, %v3243_v49  ;;  %v1330_v59 = vmul.f32 %v3242_v48, %v4823_v57  ;;  %v4835_v49 = vpop.permute.xlu0 %1272  ;;  %v4837_v54 = vpop.permute.xlu1 %1277 }
 0x1e2   : > { %5209 = vst [vmem:[#allocation23_spill] sm:$0xff] %v4835_v49  ;;  %5210 = vst [vmem:[#allocation24_spill] sm:$0xff] %v4837_v54 }
 0x1e3   : > { %v1331_v61 = vmul.f32 %v3245_v16, %v4825_v58 }
 0x1e5   : > { %v3246_v62 = vpop.f32.mrb[44].mxu0  ;;  %v1352_v63 = vpack.c.bf16 %v1331_v61, %v1330_v59  ;;  %v3980_v61 = vld [vmem:[#allocation6 + $0x30] sm:$0xff]  }
 0x1e6   : > { %v3247_v0 = vpop.f32.mrb[45].mxu0  ;;  %3630 = vmatprep.subr.bf16.mxu1 %v3980_v61 }
 0x1e7   : > { %v3248_v6 = vadd.f32 %v3247_v0, %v3246_v62  ;;  %v3249_v23 = vpop.f32.mrb[46].mxu0  ;;  %3606 = vmatprep.mubr.bf16.mxu1 %v1352_v63  ;;  %3631 = vmatpush3.bf16.msra.mxu1 %v3980_v61 }
 0x1e8   : > { %v3250_v25 = vpop.f32.mrb[47].mxu0 }
 0x1e9   : > { %v3251_v28 = vadd.f32 %v3250_v25, %v3249_v23  ;;  %v1332_v8 = vmul.f32 %v3248_v6, %v4829_v29  ;;  %v3981_v25 = vld [vmem:[#allocation6 + $0x38] sm:$0xff]  }
 0x1ea   : > { %3632 = vmatprep.subr.bf16.mxu1 %v3981_v25 }
 0x1eb   : > { %v1333_v33 = vmul.f32 %v3251_v28, %v4831_v31  ;;  %3633 = vmatpush3.bf16.msra.mxu1 %v3981_v25 }
 0x1ed   : > { %v3252_v10 = vpop.f32.mrb[48].mxu0  ;;  %v1353_v7 = vpack.c.bf16 %v1333_v33, %v1332_v8  ;;  %v4841_v33 = vpop.permute.xlu0 %1282 }
 0x1ee   : > { %v3253_v45 = vpop.f32.mrb[49].mxu0  ;;  %5211 = vst [vmem:[#allocation25_spill] sm:$0xff] %v4841_v33 }
 0x1ef   : > { %v3254_v46 = vadd.f32 %v3253_v45, %v3252_v10  ;;  %v3255_v20 = vpop.f32.mrb[50].mxu0  ;;  %3607 = vmatmul.mubr.bf16.gmra.mrb[20].mxu1 %v1353_v7  ;;  %v4843_v10 = vpop.permute.xlu1 %1287 }
 0x1f0   : > { %v3256_v47 = vpop.f32.mrb[51].mxu0  ;;  %5212 = vst [vmem:[#allocation26_spill] sm:$0xff] %v4843_v10 }
 0x1f1   : > { %v3257_v48 = vadd.f32 %v3256_v47, %v3255_v20  ;;  %v1334_v16 = vmul.f32 %v3254_v46, %v4835_v49 }
 0x1f3   : > { %v1335_v59 = vmul.f32 %v3257_v48, %v4837_v54 }
 0x1f5   : > { %v3258_v62 = vpop.f32.mrb[52].mxu0  ;;  %v1354_v63 = vpack.c.bf16 %v1335_v59, %v1334_v16 }
 0x1f6   : > { %v3259_v0 = vpop.f32.mrb[53].mxu0 }
 0x1f7   : > { %v3260_v6 = vadd.f32 %v3259_v0, %v3258_v62  ;;  %v3261_v23 = vpop.f32.mrb[54].mxu0  ;;  %3610 = vmatprep.mubr.bf16.mxu1 %v1354_v63  ;;  %v4847_v62 = vpop.permute.xlu0 %1292 }
 0x1f8   : > { %v3262_v28 = vpop.f32.mrb[55].mxu0  ;;  %5213 = vst [vmem:[#allocation27_spill] sm:$0xff] %v4847_v62  ;;  %v4849_v63 = vpop.permute.xlu1 %1297 }
 0x1f9   : > { %v3263_v8 = vadd.f32 %v3262_v28, %v3261_v23  ;;  %v1336_v7 = vmul.f32 %v3260_v6, %v4841_v33  ;;  %5214 = vst [vmem:[#allocation28_spill] sm:$0xff] %v4849_v63 }
 0x1fb   : > { %v1337_v45 = vmul.f32 %v3263_v8, %v4843_v10 }
 0x1fd   : > { %v3264_v46 = vpop.f32.mrb[56].mxu0  ;;  %v1355_v20 = vpack.c.bf16 %v1337_v45, %v1336_v7 }
 0x1fe   : > { %v3265_v47 = vpop.f32.mrb[57].mxu0 }
 0x1ff   : > { %v3266_v48 = vadd.f32 %v3265_v47, %v3264_v46  ;;  %v3267_v16 = vpop.f32.mrb[58].mxu0  ;;  %3611 = vmatmul.mubr.bf16.gmra.mrb[24].mxu1 %v1355_v20  ;;  %v4853_v46 = vpop.permute.xlu0 %1302 }
 0x200   : > { %v3268_v59 = vpop.f32.mrb[59].mxu0  ;;  %5215 = vst [vmem:[#allocation29_spill] sm:$0xff] %v4853_v46  ;;  %v4855_v20 = vpop.permute.xlu1 %1307 }
 0x201   : > { %v3269_v61 = vadd.f32 %v3268_v59, %v3267_v16  ;;  %v1338_v0 = vmul.f32 %v3266_v48, %v4847_v62  ;;  %5216 = vst [vmem:[#allocation30_spill] sm:$0xff] %v4855_v20  ;;  %v4862_v48 = vld [vmem:[%s5147_s7] ss:$0 sm:$0xff] }
 0x203   : > { %v1339_v23 = vmul.f32 %v3269_v61, %v4849_v63 }
 0x205   : > { %v3270_v25 = vpop.f32.mrb[60].mxu0  ;;  %v1356_v6 = vpack.c.bf16 %v1339_v23, %v1338_v0 }
 0x206   : > { %v3271_v28 = vpop.f32.mrb[61].mxu0 }
 0x207   : > { %v3272_v8 = vadd.f32 %v3271_v28, %v3270_v25  ;;  %v3273_v10 = vpop.f32.mrb[62].mxu0  ;;  %3614 = vmatprep.mubr.bf16.mxu1 %v1356_v6 }
 0x208   : > { %v3274_v7 = vpop.f32.mrb[63].mxu0 }
 0x209   : > { %v3275_v45 = vadd.f32 %v3274_v7, %v3273_v10  ;;  %v1340_v47 = vmul.f32 %v3272_v8, %v4853_v46 }
 0x20b   : > { %v1341_v16 = vmul.f32 %v3275_v45, %v4855_v20 }
 0x20d   : > { %v1357_v59 = vpack.c.bf16 %v1341_v16, %v1340_v47 }
 0x20f   : > { %3615 = vmatmul.mubr.bf16.gmra.mrb[28].mxu1 %v1357_v59 }
 0x272   : > { %v3588_v61 = vpop.f32.mrb[0].mxu1 }
 0x273   : > { %v1817_v0 = vadd.f32 %v3588_v61, %v4862_v48  ;;  %v1681_v23 = vpop.f32.mrb[1].mxu1 }
 0x274   : > { %v1815_v10 = vadd.f32 %v4862_v48, %v1681_v23  ;;  %v3589_v25 = vpop.f32.mrb[2].mxu1 }
 0x275   : > { %v1818_v6 = vadd.f32 %v3589_v25, %v4862_v48  ;;  %v1684_v28 = vpop.f32.mrb[3].mxu1  ;;  %v1849_v7 = vmax.f32 %v1817_v0, 0.0 }
 0x276   : > { %v1816_v8 = vadd.f32 %v4862_v48, %v1684_v28  ;;  %v1847_v47 = vmax.f32 %v1815_v10, 0.0 }
 0x277   : > { %v1850_v45 = vmax.f32 %v1818_v6, 0.0 }
 0x278   : > { %v1848_v16 = vmax.f32 %v1816_v8, 0.0 }
 0x279   : > { %v4868_v59 = vpack.c.bf16 %v1850_v45, %v1849_v7 }
 0x27a   : > { %v4870_v20 = vpack.c.bf16 %v1848_v16, %v1847_v47 }
 0x27c   : > { %3634 = vmatprep.mubr.bf16.mxu1 %v4870_v20 }
 0x27d   : > { %3635 = vmatmul.mubr.bf16.vlgmr.msra.gmra.mrb[32].mxu1 %v4868_v59 }
 0x282   : > { %v3592_v61 = vpop.f32.mrb[4].mxu1 }
 0x283   : > { %v1821_v23 = vadd.f32 %v3592_v61, %v4862_v48  ;;  %v1697_v46 = vpop.f32.mrb[5].mxu1 }
 0x284   : > { %v1819_v25 = vadd.f32 %v4862_v48, %v1697_v46  ;;  %v3593_v63 = vpop.f32.mrb[6].mxu1 }
 0x285   : > { %v1822_v0 = vadd.f32 %v3593_v63, %v4862_v48  ;;  %v1700_v6 = vpop.f32.mrb[7].mxu1  ;;  %v1853_v28 = vmax.f32 %v1821_v23, 0.0 }
 0x286   : > { %v1820_v10 = vadd.f32 %v4862_v48, %v1700_v6  ;;  %v1851_v7 = vmax.f32 %v1819_v25, 0.0 }
 0x287   : > { %v1854_v8 = vmax.f32 %v1822_v0, 0.0 }
 0x288   : > { %v1852_v45 = vmax.f32 %v1820_v10, 0.0 }
 0x289   : > { %v4878_v47 = vpack.c.bf16 %v1854_v8, %v1853_v28 }
 0x28a   : > { %v4880_v16 = vpack.c.bf16 %v1852_v45, %v1851_v7 }
 0x28c   : > { %3638 = vmatprep.mubr.bf16.mxu1 %v4880_v16 }
 0x28d   : > { %3639 = vmatmul.mubr.bf16.gmra.mrb[36].mxu1 %v4878_v47 }
 0x292   : > { %v3596_v61 = vpop.f32.mrb[8].mxu1 }
 0x293   : > { %v1825_v46 = vadd.f32 %v3596_v61, %v4862_v48  ;;  %v1713_v62 = vpop.f32.mrb[9].mxu1 }
 0x294   : > { %v1823_v63 = vadd.f32 %v4862_v48, %v1713_v62  ;;  %v3597_v33 = vpop.f32.mrb[10].mxu1 }
 0x295   : > { %v1826_v23 = vadd.f32 %v3597_v33, %v4862_v48  ;;  %v1716_v0 = vpop.f32.mrb[11].mxu1  ;;  %v1857_v6 = vmax.f32 %v1825_v46, 0.0 }
 0x296   : > { %v1824_v25 = vadd.f32 %v4862_v48, %v1716_v0  ;;  %v1855_v28 = vmax.f32 %v1823_v63, 0.0 }
 0x297   : > { %v1858_v10 = vmax.f32 %v1826_v23, 0.0 }
 0x298   : > { %v1856_v8 = vmax.f32 %v1824_v25, 0.0 }
 0x299   : > { %v4888_v7 = vpack.c.bf16 %v1858_v10, %v1857_v6 }
 0x29a   : > { %v4890_v45 = vpack.c.bf16 %v1856_v8, %v1855_v28 }
 0x29c   : > { %3642 = vmatprep.mubr.bf16.mxu1 %v4890_v45 }
 0x29d   : > { %3643 = vmatmul.mubr.bf16.gmra.mrb[40].mxu1 %v4888_v7 }
 0x2a2   : > { %v3600_v61 = vpop.f32.mrb[12].mxu1 }
 0x2a3   : > { %v1829_v62 = vadd.f32 %v3600_v61, %v4862_v48  ;;  %v1729_v54 = vpop.f32.mrb[13].mxu1 }
 0x2a4   : > { %v1827_v33 = vadd.f32 %v4862_v48, %v1729_v54  ;;  %v3601_v49 = vpop.f32.mrb[14].mxu1 }
 0x2a5   : > { %v1830_v46 = vadd.f32 %v3601_v49, %v4862_v48  ;;  %v1732_v23 = vpop.f32.mrb[15].mxu1  ;;  %v1861_v0 = vmax.f32 %v1829_v62, 0.0 }
 0x2a6   : > { %v1828_v63 = vadd.f32 %v4862_v48, %v1732_v23  ;;  %v1859_v6 = vmax.f32 %v1827_v33, 0.0 }
 0x2a7   : > { %v1862_v25 = vmax.f32 %v1830_v46, 0.0 }
 0x2a8   : > { %v1860_v10 = vmax.f32 %v1828_v63, 0.0 }
 0x2a9   : > { %v4898_v28 = vpack.c.bf16 %v1862_v25, %v1861_v0 }
 0x2aa   : > { %v4900_v8 = vpack.c.bf16 %v1860_v10, %v1859_v6 }
 0x2ac   : > { %3646 = vmatprep.mubr.bf16.mxu1 %v4900_v8 }
 0x2ad   : > { %3647 = vmatmul.mubr.bf16.gmra.mrb[44].mxu1 %v4898_v28 }
 0x2b2   : > { %v3604_v61 = vpop.f32.mrb[16].mxu1 }
 0x2b3   : > { %v1833_v54 = vadd.f32 %v3604_v61, %v4862_v48  ;;  %v1745_v31 = vpop.f32.mrb[17].mxu1 }
 0x2b4   : > { %v1831_v49 = vadd.f32 %v4862_v48, %v1745_v31  ;;  %v3605_v29 = vpop.f32.mrb[18].mxu1 }
 0x2b5   : > { %v1834_v62 = vadd.f32 %v3605_v29, %v4862_v48  ;;  %v1748_v46 = vpop.f32.mrb[19].mxu1  ;;  %v1865_v23 = vmax.f32 %v1833_v54, 0.0 }
 0x2b6   : > { %v1832_v33 = vadd.f32 %v4862_v48, %v1748_v46  ;;  %v1863_v0 = vmax.f32 %v1831_v49, 0.0 }
 0x2b7   : > { %v1866_v63 = vmax.f32 %v1834_v62, 0.0 }
 0x2b8   : > { %v1864_v25 = vmax.f32 %v1832_v33, 0.0 }
 0x2b9   : > { %v1888_v6 = vpack.c.bf16 %v1866_v63, %v1865_v23 }
 0x2ba   : > { %v1887_v10 = vpack.c.bf16 %v1864_v25, %v1863_v0 }
 0x2bc   : > { %3324 = vmatprep.subr.bf16.mxu0 %v1887_v10  ;;  %3650 = vmatprep.mubr.bf16.mxu1 %v1887_v10 }
 0x2bd   : > { %3325 = vmatpush3.bf16.msra.mxu0 %v4870_v20  ;;  %3651 = vmatmul.mubr.bf16.gmra.mrb[48].mxu1 %v1888_v6 }
 0x2be   : > { %3326 = vmatprep.subr.bf16.mxu0 %v1888_v6 }
 0x2c1   : > { %3327 = vmatpush3.bf16.msra.mxu0 %v4868_v59 }
 0x2c2   : > { %v3608_v31 = vpop.f32.mrb[20].mxu1 }
 0x2c3   : > { %v1837_v29 = vadd.f32 %v3608_v31, %v4862_v48  ;;  %v1761_v61 = vpop.f32.mrb[21].mxu1 }
 0x2c4   : > { %v1835_v46 = vadd.f32 %v4862_v48, %v1761_v61  ;;  %v3609_v54 = vpop.f32.mrb[22].mxu1 }
 0x2c5   : > { %v1838_v49 = vadd.f32 %v3609_v54, %v4862_v48  ;;  %v1764_v62 = vpop.f32.mrb[23].mxu1  ;;  %v1869_v23 = vmax.f32 %v1837_v29, 0.0 }
 0x2c6   : > { %v1836_v33 = vadd.f32 %v4862_v48, %v1764_v62  ;;  %v1867_v0 = vmax.f32 %v1835_v46, 0.0 }
 0x2c7   : > { %v1870_v63 = vmax.f32 %v1838_v49, 0.0 }
 0x2c8   : > { %v1868_v20 = vmax.f32 %v1836_v33, 0.0 }
 0x2c9   : > { %v1890_v25 = vpack.c.bf16 %v1870_v63, %v1869_v23 }
 0x2ca   : > { %v1889_v6 = vpack.c.bf16 %v1868_v20, %v1867_v0 }
 0x2cc   : > { %3328 = vmatprep.subr.bf16.mxu0 %v1889_v6  ;;  %3654 = vmatprep.mubr.bf16.mxu1 %v1889_v6 }
 0x2cd   : > { %3329 = vmatpush3.bf16.msra.mxu0 %v4880_v16  ;;  %3655 = vmatmul.mubr.bf16.gmra.mrb[52].mxu1 %v1890_v25 }
 0x2ce   : > { %3330 = vmatprep.subr.bf16.mxu0 %v1890_v25 }
 0x2d1   : > { %3331 = vmatpush3.bf16.msra.mxu0 %v4878_v47 }
 0x2d2   : > { %v3612_v59 = vpop.f32.mrb[24].mxu1 }
 0x2d3   : > { %v1841_v10 = vadd.f32 %v3612_v59, %v4862_v48  ;;  %v1777_v31 = vpop.f32.mrb[25].mxu1 }
 0x2d4   : > { %v1839_v61 = vadd.f32 %v4862_v48, %v1777_v31  ;;  %v3613_v29 = vpop.f32.mrb[26].mxu1 }
 0x2d5   : > { %v1842_v46 = vadd.f32 %v3613_v29, %v4862_v48  ;;  %v1780_v54 = vpop.f32.mrb[27].mxu1  ;;  %v1873_v62 = vmax.f32 %v1841_v10, 0.0 }
 0x2d6   : > { %v1840_v49 = vadd.f32 %v4862_v48, %v1780_v54  ;;  %v1871_v23 = vmax.f32 %v1839_v61, 0.0 }
 0x2d7   : > { %v1874_v33 = vmax.f32 %v1842_v46, 0.0 }
 0x2d8   : > { %v1872_v16 = vmax.f32 %v1840_v49, 0.0 }
 0x2d9   : > { %v1892_v63 = vpack.c.bf16 %v1874_v33, %v1873_v62  ;;  %v3983_v33 = vld [vmem:[%s5217_s22 + $0x8] sm:$0xff]  }
 0x2da   : > { %v1891_v0 = vpack.c.bf16 %v1872_v16, %v1871_v23  ;;  %v4004_v23 = vld [vmem:[%s4473_s13] ss:$8 sps:$4 sm:$0xff]   ;;  %v4005_v16 = vld [vmem:[%s4473_s13 + $0x14] ss:$8 sps:$4 sm:$0xff]  }
 0x2dc   : > { %3332 = vmatprep.subr.bf16.mxu0 %v1891_v0  ;;  %3658 = vmatprep.mubr.bf16.mxu1 %v1891_v0  ;;  %v4008_v0 = vld [vmem:[%s4473_s13 + $0x20] ss:$8 sps:$4 sm:$0xff]  }
 0x2dd   : > { %3333 = vmatpush3.bf16.msra.mxu0 %v4890_v45  ;;  %3659 = vmatmul.mubr.bf16.gmra.mrb[56].mxu1 %v1892_v63 }
 0x2de   : > { %3334 = vmatprep.subr.bf16.mxu0 %v1892_v63  ;;  %v4006_v63 = vld [vmem:[%s4473_s13 + $0x10] ss:$8 sps:$4 sm:$0xff]  }
 0x2e1   : > { %3335 = vmatpush3.bf16.msra.mxu0 %v4888_v7  ;;  %v3982_v7 = vld [vmem:[%s5217_s22] sm:$0xff]  }
 0x2e2   : > { %v3616_v47 = vpop.f32.mrb[28].mxu1  ;;  %3666 = vmatprep.subr.bf16.mxu1 %v3982_v7 }
 0x2e3   : > { %v1845_v20 = vadd.f32 %v3616_v47, %v4862_v48  ;;  %v1793_v25 = vpop.f32.mrb[29].mxu1  ;;  %3667 = vmatpush3.bf16.msra.mxu1 %v3982_v7  ;;  %v4009_v47 = vld [vmem:[%s4473_s13 + $0x34] ss:$8 sps:$4 sm:$0xff]  }
 0x2e4   : > { %v1843_v6 = vadd.f32 %v4862_v48, %v1793_v25  ;;  %v3617_v59 = vpop.f32.mrb[30].mxu1  ;;  %3668 = vmatprep.subr.bf16.mxu1 %v3983_v33  ;;  %v4011_v25 = vld [vmem:[%s4473_s13 + $0x44] ss:$8 sps:$4 sm:$0xff]  }
 0x2e5   : > { %v1846_v10 = vadd.f32 %v3617_v59, %v4862_v48  ;;  %v1796_v31 = vpop.f32.mrb[31].mxu1  ;;  %v1877_v29 = vmax.f32 %v1845_v20, 0.0  ;;  %v4010_v20 = vld [vmem:[%s4473_s13 + $0x30] ss:$8 sps:$4 sm:$0xff]   ;;  %v4013_v59 = vld [vmem:[%s4473_s13 + $0x54] ss:$8 sps:$4 sm:$0xff]  }
 0x2e6   : > { %v1844_v61 = vadd.f32 %v4862_v48, %v1796_v31  ;;  %v1875_v54 = vmax.f32 %v1843_v6, 0.0  ;;  %v3984_v48 = vld [vmem:[%s5217_s22 + $0x10] sm:$0xff]   ;;  %v4012_v6 = vld [vmem:[%s4473_s13 + $0x40] ss:$8 sps:$4 sm:$0xff]   ;;  %v4015_v31 = vld [vmem:[%s4473_s13 + $0x64] ss:$8 sps:$4 sm:$0xff]  }
 0x2e7   : > { %v1878_v46 = vmax.f32 %v1846_v10, 0.0  ;;  %3669 = vmatpush3.bf16.msra.mxu1 %v3983_v33  ;;  %v4014_v10 = vld [vmem:[%s4473_s13 + $0x50] ss:$8 sps:$4 sm:$0xff]  }
 0x2e8   : > { %v1876_v45 = vmax.f32 %v1844_v61, 0.0  ;;  %3670 = vmatprep.subr.bf16.mxu1 %v3984_v48 }
 0x2e9   : > { %v1894_v49 = vpack.c.bf16 %v1878_v46, %v1877_v29 }
 0x2ea   : > { %v1893_v62 = vpack.c.bf16 %v1876_v45, %v1875_v54 }
 0x2eb   : > { %3671 = vmatpush3.bf16.msra.mxu1 %v3984_v48 }
 0x2ec   : > { %3336 = vmatprep.subr.bf16.mxu0 %v1893_v62  ;;  %3662 = vmatprep.mubr.bf16.mxu1 %v1893_v62 }
 0x2ed   : > { %3337 = vmatpush3.bf16.msra.mxu0 %v4900_v8  ;;  %3663 = vmatmul.mubr.bf16.gmra.mrb[60].mxu1 %v1894_v49  ;;  %v3985_v8 = vld [vmem:[%s5217_s22 + $0x18] sm:$0xff]  }
 0x2ee   : > { %3338 = vmatprep.subr.bf16.mxu0 %v1894_v49  ;;  %3672 = vmatprep.subr.bf16.mxu1 %v3985_v8 }
 0x2ef   : > { %3673 = vmatpush3.bf16.msra.mxu1 %v3985_v8 }
 0x2f1   : > { %3339 = vmatpush3.bf16.msra.mxu0 %v4898_v28  ;;  %v4007_v28 = vld [vmem:[%s4473_s13 + $0x24] ss:$8 sps:$4 sm:$0xff]  }
 0x2f4   : > { %1928 = vmatmul.mubr.bf16.vlgmr.msra.gmra.mrb[64].mxu0 %v4004_v23 }
 0x2f5   : > { %1935 = vmatprep.mubr.bf16.mxu0 %v4005_v16 }
 0x2fc   : > { %1936 = vmatmul.mubr.bf16.gmra.mrb[68].mxu0 %v4006_v63 }
 0x2fd   : > { %1943 = vmatprep.mubr.bf16.mxu0 %v4007_v28 }
 0x304   : > { %1944 = vmatmul.mubr.bf16.gmra.mrb[72].mxu0 %v4008_v0 }
 0x305   : > { %1951 = vmatprep.mubr.bf16.mxu0 %v4009_v47 }
 0x30c   : > { %1952 = vmatmul.mubr.bf16.gmra.mrb[76].mxu0 %v4010_v20 }
 0x30d   : > { %1959 = vmatprep.mubr.bf16.mxu0 %v4011_v25 }
 0x314   : > { %1960 = vmatmul.mubr.bf16.gmra.mrb[80].mxu0 %v4012_v6 }
 0x315   : > { %1967 = vmatprep.mubr.bf16.mxu0 %v4013_v59 }
 0x31c   : > { %1968 = vmatmul.mubr.bf16.gmra.mrb[84].mxu0 %v4014_v10 }
 0x31d   : > { %1975 = vmatprep.mubr.bf16.mxu0 %v4015_v31 }
 0x324   : > { %1976 = vmatmul.mubr.bf16.gmra.mrb[88].mxu0 %v4641_v21  ;;  %v3986_v21 = vld [vmem:[%s5217_s22 + $0x20] sm:$0xff]  }
 0x325   : > { %1983 = vmatprep.mubr.bf16.mxu0 %v4647_v24  ;;  %3674 = vmatprep.subr.bf16.mxu1 %v3986_v21  ;;  %v3987_v24 = vld [vmem:[%s5217_s22 + $0x28] sm:$0xff]  }
 0x326   : > { %3675 = vmatpush3.bf16.msra.mxu1 %v3986_v21 }
 0x327   : > { %3676 = vmatprep.subr.bf16.mxu1 %v3987_v24 }
 0x32a   : > { %3677 = vmatpush3.bf16.msra.mxu1 %v3987_v24 }
 0x32c   : > { %1984 = vmatmul.mubr.bf16.gmra.mrb[92].mxu0 %v4664_v30  ;;  %v3988_v30 = vld [vmem:[%s5217_s22 + $0x30] sm:$0xff]  }
 0x32d   : > { %1991 = vmatprep.mubr.bf16.mxu0 %v4670_v32  ;;  %3678 = vmatprep.subr.bf16.mxu1 %v3988_v30  ;;  %v3989_v32 = vld [vmem:[%s5217_s22 + $0x38] sm:$0xff]  }
 0x32e   : > { %3679 = vmatpush3.bf16.msra.mxu1 %v3988_v30 }
 0x32f   : > { %3680 = vmatprep.subr.bf16.mxu1 %v3989_v32 }
 0x332   : > { %3681 = vmatpush3.bf16.msra.mxu1 %v3989_v32 }
 0x334   : > { %1992 = vmatmul.mubr.bf16.gmra.mrb[96].mxu0 %v4680_v36 }
 0x335   : > { %1999 = vmatprep.mubr.bf16.mxu0 %v4683_v37 }
 0x33c   : > { %2000 = vmatmul.mubr.bf16.gmra.mrb[100].mxu0 %v4690_v12 }
 0x33d   : > { %2007 = vmatprep.mubr.bf16.mxu0 %v4693_v14 }
 0x344   : > { %2008 = vmatmul.mubr.bf16.gmra.mrb[104].mxu0 %v4700_v38 }
 0x345   : > { %2015 = vmatprep.mubr.bf16.mxu0 %v4703_v39 }
 0x34c   : > { %2016 = vmatmul.mubr.bf16.gmra.mrb[108].mxu0 %v4713_v19 }
 0x34d   : > { %2023 = vmatprep.mubr.bf16.mxu0 %v4716_v5 }
 0x354   : > { %2024 = vmatmul.mubr.bf16.gmra.mrb[112].mxu0 %v4729_v9 }
 0x355   : > { %2031 = vmatprep.mubr.bf16.mxu0 %v4732_v40 }
 0x35c   : > { %2032 = vmatmul.mubr.bf16.gmra.mrb[116].mxu0 %v4742_v13 }
 0x35d   : > { %2039 = vmatprep.mubr.bf16.mxu0 %v4745_v41 }
 0x364   : > { %2040 = vmatmul.mubr.bf16.gmra.mrb[120].mxu0 %v4751_v42 }
 0x365   : > { %2047 = vmatprep.mubr.bf16.mxu0 %v4754_v43 }
 0x36c   : > { %2048 = vmatmul.mubr.bf16.gmra.mrb[124].mxu0 %v4759_v15 }
 0x3c7   : > { %v3340_v36 = vpop.f32.mrb[64].mxu0 }
 0x3c8   : > { %v3341_v37 = vpop.f32.mrb[65].mxu0 }
 0x3c9   : > { %v3342_v12 = vadd.f32 %v3341_v37, %v3340_v36  ;;  %v3343_v14 = vpop.f32.mrb[66].mxu0 }
 0x3ca   : > { %v3344_v38 = vpop.f32.mrb[67].mxu0 }
 0x3cb   : > { %v3345_v39 = vadd.f32 %v3344_v38, %v3343_v14  ;;  %v2056_v19 = vmul.f32 %v3342_v12, %v4763_v18 }
 0x3cd   : > { %v2057_v5 = vmul.f32 %v3345_v39, %v4765_v50 }
 0x3cf   : > { %v3346_v9 = vpop.f32.mrb[68].mxu0  ;;  %v2088_v40 = vpack.c.bf16 %v2057_v5, %v2056_v19 }
 0x3d0   : > { %v3347_v13 = vpop.f32.mrb[69].mxu0 }
 0x3d1   : > { %v3348_v41 = vadd.f32 %v3347_v13, %v3346_v9  ;;  %v3349_v61 = vpop.f32.mrb[70].mxu0  ;;  %3682 = vmatprep.mubr.bf16.mxu1 %v2088_v40 }
 0x3d2   : > { %v3350_v42 = vpop.f32.mrb[71].mxu0 }
 0x3d3   : > { %v3351_v43 = vadd.f32 %v3350_v42, %v3349_v61  ;;  %v2058_v15 = vmul.f32 %v3348_v41, %v4769_v53 }
 0x3d5   : > { %v2059_v29 = vmul.f32 %v3351_v43, %v4771_v60 }
 0x3d7   : > { %v2089_v46 = vpack.c.bf16 %v2059_v29, %v2058_v15  ;;  %v3352_v54 = vpop.f32.mrb[72].mxu0 }
 0x3d8   : > { %v3353_v45 = vpop.f32.mrb[73].mxu0 }
 0x3d9   : > { %v3354_v49 = vadd.f32 %v3353_v45, %v3352_v54  ;;  %v3355_v62 = vpop.f32.mrb[74].mxu0  ;;  %3683 = vmatmul.mubr.bf16.vlgmr.msra.gmra.mrb[32].mxu1 %v2089_v46 }
 0x3da   : > { %v3356_v18 = vpop.f32.mrb[75].mxu0 }
 0x3db   : > { %v3357_v50 = vadd.f32 %v3356_v18, %v3355_v62  ;;  %v2060_v7 = vmul.f32 %v3354_v49, %v4775_v26 }
 0x3dd   : > { %v2061_v33 = vmul.f32 %v3357_v50, %v4777_v27 }
 0x3df   : > { %v3358_v48 = vpop.f32.mrb[76].mxu0  ;;  %v2090_v23 = vpack.c.bf16 %v2061_v33, %v2060_v7 }
 0x3e0   : > { %v3359_v8 = vpop.f32.mrb[77].mxu0 }
 0x3e1   : > { %v3360_v16 = vadd.f32 %v3359_v8, %v3358_v48  ;;  %v3361_v63 = vpop.f32.mrb[78].mxu0  ;;  %3686 = vmatprep.mubr.bf16.mxu1 %v2090_v23 }
 0x3e2   : > { %v3362_v53 = vpop.f32.mrb[79].mxu0 }
 0x3e3   : > { %v3363_v60 = vadd.f32 %v3362_v53, %v3361_v63  ;;  %v2062_v28 = vmul.f32 %v3360_v16, %v4781_v11 }
 0x3e5   : > { %v2063_v0 = vmul.f32 %v3363_v60, %v4783_v44 }
 0x3e7   : > { %v3364_v47 = vpop.f32.mrb[80].mxu0  ;;  %v2091_v20 = vpack.c.bf16 %v2063_v0, %v2062_v28 }
 0x3e8   : > { %v3365_v25 = vpop.f32.mrb[81].mxu0 }
 0x3e9   : > { %v3366_v6 = vadd.f32 %v3365_v25, %v3364_v47  ;;  %v3367_v59 = vpop.f32.mrb[82].mxu0  ;;  %3687 = vmatmul.mubr.bf16.gmra.mrb[36].mxu1 %v2091_v20 }
 0x3ea   : > { %v3368_v26 = vpop.f32.mrb[83].mxu0 }
 0x3eb   : > { %v3369_v27 = vadd.f32 %v3368_v26, %v3367_v59  ;;  %v2064_v10 = vmul.f32 %v3366_v6, %v4787_v55 }
 0x3ed   : > { %v2065_v31 = vmul.f32 %v3369_v27, %v4789_v56 }
 0x3ef   : > { %v3370_v21 = vpop.f32.mrb[84].mxu0  ;;  %v2092_v24 = vpack.c.bf16 %v2065_v31, %v2064_v10  ;;  %v5218_v31 = vld [vmem:[#allocation21_spill] sm:$0xff] }
 0x3f0   : > { %v3371_v30 = vpop.f32.mrb[85].mxu0 }
 0x3f1   : > { %v3372_v32 = vadd.f32 %v3371_v30, %v3370_v21  ;;  %v3373_v36 = vpop.f32.mrb[86].mxu0  ;;  %3690 = vmatprep.mubr.bf16.mxu1 %v2092_v24  ;;  %v5219_v24 = vld [vmem:[#allocation22_spill] sm:$0xff] }
 0x3f2   : > { %v3374_v11 = vpop.f32.mrb[87].mxu0 }
 0x3f3   : > { %v3375_v44 = vadd.f32 %v3374_v11, %v3373_v36  ;;  %v2066_v37 = vmul.f32 %v3372_v32, %v4793_v3 }
 0x3f5   : > { %v2067_v12 = vmul.f32 %v3375_v44, %v4795_v4 }
 0x3f7   : > { %v3376_v14 = vpop.f32.mrb[88].mxu0  ;;  %v2093_v38 = vpack.c.bf16 %v2067_v12, %v2066_v37  ;;  %v5220_v12 = vld [vmem:[#allocation23_spill] sm:$0xff] }
 0x3f8   : > { %v3377_v39 = vpop.f32.mrb[89].mxu0 }
 0x3f9   : > { %v3378_v19 = vadd.f32 %v3377_v39, %v3376_v14  ;;  %v3379_v5 = vpop.f32.mrb[90].mxu0  ;;  %3691 = vmatmul.mubr.bf16.gmra.mrb[40].mxu1 %v2093_v38  ;;  %v5221_v38 = vld [vmem:[#allocation24_spill] sm:$0xff] }
 0x3fa   : > { %v3380_v55 = vpop.f32.mrb[91].mxu0 }
 0x3fb   : > { %v3381_v56 = vadd.f32 %v3380_v55, %v3379_v5  ;;  %v2068_v9 = vmul.f32 %v3378_v19, %v4799_v34 }
 0x3fd   : > { %v2069_v40 = vmul.f32 %v3381_v56, %v4801_v35 }
 0x3ff   : > { %v3382_v13 = vpop.f32.mrb[92].mxu0  ;;  %v2094_v41 = vpack.c.bf16 %v2069_v40, %v2068_v9 }
 0x400   : > { %v3383_v61 = vpop.f32.mrb[93].mxu0 }
 0x401   : > { %v3384_v42 = vadd.f32 %v3383_v61, %v3382_v13  ;;  %v3385_v43 = vpop.f32.mrb[94].mxu0  ;;  %3694 = vmatprep.mubr.bf16.mxu1 %v2094_v41  ;;  %v5222_v41 = vld [vmem:[#allocation25_spill] sm:$0xff] }
 0x402   : > { %v3386_v3 = vpop.f32.mrb[95].mxu0 }
 0x403   : > { %v3387_v4 = vadd.f32 %v3386_v3, %v3385_v43  ;;  %v2070_v15 = vmul.f32 %v3384_v42, %v4805_v51  ;;  %v5223_v42 = vld [vmem:[#allocation26_spill] sm:$0xff] }
 0x405   : > { %v2071_v29 = vmul.f32 %v3387_v4, %v4807_v52 }
 0x407   : > { %v3388_v46 = vpop.f32.mrb[96].mxu0  ;;  %v2095_v54 = vpack.c.bf16 %v2071_v29, %v2070_v15 }
 0x408   : > { %v3389_v45 = vpop.f32.mrb[97].mxu0 }
 0x409   : > { %v3390_v49 = vadd.f32 %v3389_v45, %v3388_v46  ;;  %v3391_v62 = vpop.f32.mrb[98].mxu0  ;;  %3695 = vmatmul.mubr.bf16.gmra.mrb[44].mxu1 %v2095_v54 }
 0x40a   : > { %v3392_v34 = vpop.f32.mrb[99].mxu0 }
 0x40b   : > { %v3393_v35 = vadd.f32 %v3392_v34, %v3391_v62  ;;  %v2072_v18 = vmul.f32 %v3390_v49, %v4811_v1  ;;  %v5224_v49 = vld [vmem:[#allocation27_spill] sm:$0xff]  ;;  %v5225_v34 = vld [vmem:[#allocation28_spill] sm:$0xff] }
 0x40d   : > { %v2073_v50 = vmul.f32 %v3393_v35, %v4813_v2 }
 0x40f   : > { %v3394_v7 = vpop.f32.mrb[100].mxu0  ;;  %v2096_v33 = vpack.c.bf16 %v2073_v50, %v2072_v18 }
 0x410   : > { %v3395_v48 = vpop.f32.mrb[101].mxu0 }
 0x411   : > { %v3396_v23 = vadd.f32 %v3395_v48, %v3394_v7  ;;  %v3397_v8 = vpop.f32.mrb[102].mxu0  ;;  %3698 = vmatprep.mubr.bf16.mxu1 %v2096_v33 }
 0x412   : > { %v3398_v51 = vpop.f32.mrb[103].mxu0 }
 0x413   : > { %v3399_v52 = vadd.f32 %v3398_v51, %v3397_v8  ;;  %v2074_v16 = vmul.f32 %v3396_v23, %v4817_v17  ;;  %v5226_v51 = vld [vmem:[#allocation29_spill] sm:$0xff] }
 0x415   : > { %v2075_v63 = vmul.f32 %v3399_v52, %v4819_v22 }
 0x417   : > { %v3400_v53 = vpop.f32.mrb[104].mxu0  ;;  %v2097_v60 = vpack.c.bf16 %v2075_v63, %v2074_v16  ;;  %v5227_v16 = vld [vmem:[#allocation30_spill] sm:$0xff] }
 0x418   : > { %v3401_v28 = vpop.f32.mrb[105].mxu0 }
 0x419   : > { %v3402_v0 = vadd.f32 %v3401_v28, %v3400_v53  ;;  %v3403_v47 = vpop.f32.mrb[106].mxu0  ;;  %3699 = vmatmul.mubr.bf16.gmra.mrb[48].mxu1 %v2097_v60  ;;  %v5018_v60 = vld [vmem:[%s5228_s23] ss:$0 sm:$0xff]  ;;  %v3992_v28 = vld [vmem:[%s4479_s9 + $0x4] ss:$8 sps:$4 sm:$0xff]   ;;  %s4106_s23 = scalar_lea.vmem %s4105_s19, 1024 }
 0x41a   : > { %v3404_v1 = vpop.f32.mrb[107].mxu0  ;;  %2697 = vmatprep.mubr.bf16.mxu0 %v3992_v28 }
 0x41b   : > { %v3405_v2 = vadd.f32 %v3404_v1, %v3403_v47  ;;  %v2076_v20 = vmul.f32 %v3402_v0, %v4823_v57 }
 0x41d   : > { %v2077_v25 = vmul.f32 %v3405_v2, %v4825_v58 }
 0x41f   : > { %v3406_v6 = vpop.f32.mrb[108].mxu0  ;;  %v2098_v59 = vpack.c.bf16 %v2077_v25, %v2076_v20 }
 0x420   : > { %v3407_v26 = vpop.f32.mrb[109].mxu0 }
 0x421   : > { %v3408_v27 = vadd.f32 %v3407_v26, %v3406_v6  ;;  %v3409_v10 = vpop.f32.mrb[110].mxu0  ;;  %3702 = vmatprep.mubr.bf16.mxu1 %v2098_v59 }
 0x422   : > { %v3410_v17 = vpop.f32.mrb[111].mxu0 }
 0x423   : > { %v3411_v22 = vadd.f32 %v3410_v17, %v3409_v10  ;;  %v2078_v21 = vmul.f32 %v3408_v27, %v5218_v31 }
 0x425   : > { %v2079_v30 = vmul.f32 %v3411_v22, %v5219_v24  ;;  %v3997_v24 = vld [vmem:[#allocation8 + $0x8] sm:$0xff]  }
 0x427   : > { %v3412_v32 = vpop.f32.mrb[112].mxu0  ;;  %v2099_v36 = vpack.c.bf16 %v2079_v30, %v2078_v21  ;;  %v3996_v21 = vld [vmem:[#allocation8] sm:$0xff]   ;;  %v3998_v30 = vld [vmem:[#allocation8 + $0x10] sm:$0xff]  }
 0x428   : > { %v3413_v11 = vpop.f32.mrb[113].mxu0  ;;  %3714 = vmatprep.subr.bf16.mxu1 %v3996_v21 }
 0x429   : > { %v3414_v44 = vadd.f32 %v3413_v11, %v3412_v32  ;;  %v3415_v37 = vpop.f32.mrb[114].mxu0  ;;  %3703 = vmatmul.mubr.bf16.gmra.mrb[52].mxu1 %v2099_v36 }
 0x42a   : > { %v3416_v57 = vpop.f32.mrb[115].mxu0  ;;  %3715 = vmatpush3.bf16.msra.mxu1 %v3996_v21 }
 0x42b   : > { %v3417_v58 = vadd.f32 %v3416_v57, %v3415_v37  ;;  %v2080_v14 = vmul.f32 %v3414_v44, %v5220_v12  ;;  %3716 = vmatprep.subr.bf16.mxu1 %v3997_v24  ;;  %v3999_v57 = vld [vmem:[#allocation8 + $0x18] sm:$0xff]  }
 0x42d   : > { %v2081_v39 = vmul.f32 %v3417_v58, %v5221_v38 }
 0x42e   : > { %3717 = vmatpush3.bf16.msra.mxu1 %v3997_v24 }
 0x42f   : > { %v3418_v19 = vpop.f32.mrb[116].mxu0  ;;  %v2100_v5 = vpack.c.bf16 %v2081_v39, %v2080_v14  ;;  %3718 = vmatprep.subr.bf16.mxu1 %v3998_v30 }
 0x430   : > { %v3419_v55 = vpop.f32.mrb[117].mxu0 }
 0x431   : > { %v3420_v56 = vadd.f32 %v3419_v55, %v3418_v19  ;;  %v3421_v9 = vpop.f32.mrb[118].mxu0  ;;  %3706 = vmatprep.mubr.bf16.mxu1 %v2100_v5 }
 0x432   : > { %v3422_v40 = vpop.f32.mrb[119].mxu0  ;;  %3719 = vmatpush3.bf16.msra.mxu1 %v3998_v30 }
 0x433   : > { %v3423_v13 = vadd.f32 %v3422_v40, %v3421_v9  ;;  %v2082_v61 = vmul.f32 %v3420_v56, %v5222_v41  ;;  %3720 = vmatprep.subr.bf16.mxu1 %v3999_v57 }
 0x435   : > { %v2083_v43 = vmul.f32 %v3423_v13, %v5223_v42 }
 0x436   : > { %3721 = vmatpush3.bf16.msra.mxu1 %v3999_v57 }
 0x437   : > { %v3424_v3 = vpop.f32.mrb[120].mxu0  ;;  %v2101_v4 = vpack.c.bf16 %v2083_v43, %v2082_v61 }
 0x438   : > { %v3425_v15 = vpop.f32.mrb[121].mxu0 }
 0x439   : > { %v3426_v29 = vadd.f32 %v3425_v15, %v3424_v3  ;;  %v3427_v46 = vpop.f32.mrb[122].mxu0  ;;  %3707 = vmatmul.mubr.bf16.gmra.mrb[56].mxu1 %v2101_v4 }
 0x43a   : > { %v3428_v54 = vpop.f32.mrb[123].mxu0 }
 0x43b   : > { %v3429_v45 = vadd.f32 %v3428_v54, %v3427_v46  ;;  %v2084_v62 = vmul.f32 %v3426_v29, %v5224_v49 }
 0x43d   : > { %v2085_v35 = vmul.f32 %v3429_v45, %v5225_v34 }
 0x43f   : > { %v3430_v18 = vpop.f32.mrb[124].mxu0  ;;  %v2102_v50 = vpack.c.bf16 %v2085_v35, %v2084_v62 }
 0x440   : > { %v3431_v7 = vpop.f32.mrb[125].mxu0 }
 0x441   : > { %v3432_v33 = vadd.f32 %v3431_v7, %v3430_v18  ;;  %v3433_v48 = vpop.f32.mrb[126].mxu0  ;;  %3710 = vmatprep.mubr.bf16.mxu1 %v2102_v50 }
 0x442   : > { %v3434_v23 = vpop.f32.mrb[127].mxu0 }
 0x443   : > { %v3435_v8 = vadd.f32 %v3434_v23, %v3433_v48  ;;  %v2086_v52 = vmul.f32 %v3432_v33, %v5226_v51 }
 0x445   : > { %v2087_v63 = vmul.f32 %v3435_v8, %v5227_v16 }
 0x447   : > { %v2103_v53 = vpack.c.bf16 %v2087_v63, %v2086_v52 }
 0x449   : > { %3711 = vmatmul.mubr.bf16.gmra.mrb[60].mxu1 %v2103_v53 }
 0x4ac   : > { %v3684_v0 = vpop.f32.mrb[32].mxu1 }
 0x4ad   : > { %v2563_v47 = vadd.f32 %v3684_v0, %v5018_v60  ;;  %v2427_v1 = vpop.f32.mrb[33].mxu1 }
 0x4ae   : > { %v2561_v2 = vadd.f32 %v5018_v60, %v2427_v1  ;;  %v3685_v20 = vpop.f32.mrb[34].mxu1 }
 0x4af   : > { %v2564_v25 = vadd.f32 %v3685_v20, %v5018_v60  ;;  %v2430_v6 = vpop.f32.mrb[35].mxu1  ;;  %v2595_v26 = vmax.f32 %v2563_v47, 0.0 }
 0x4b0   : > { %v2562_v59 = vadd.f32 %v5018_v60, %v2430_v6  ;;  %v2593_v10 = vmax.f32 %v2561_v2, 0.0 }
 0x4b1   : > { %v2596_v27 = vmax.f32 %v2564_v25, 0.0 }
 0x4b2   : > { %v2594_v17 = vmax.f32 %v2562_v59, 0.0 }
 0x4b3   : > { %v5025_v22 = vpack.c.bf16 %v2596_v27, %v2595_v26 }
 0x4b4   : > { %v5027_v31 = vpack.c.bf16 %v2594_v17, %v2593_v10 }
 0x4bc   : > { %v3688_v32 = vpop.f32.mrb[36].mxu1 }
 0x4bd   : > { %v2567_v36 = vadd.f32 %v3688_v32, %v5018_v60  ;;  %v2443_v11 = vpop.f32.mrb[37].mxu1 }
 0x4be   : > { %v2565_v44 = vadd.f32 %v5018_v60, %v2443_v11  ;;  %v3689_v37 = vpop.f32.mrb[38].mxu1 }
 0x4bf   : > { %v2568_v58 = vadd.f32 %v3689_v37, %v5018_v60  ;;  %v2446_v12 = vpop.f32.mrb[39].mxu1  ;;  %v2599_v38 = vmax.f32 %v2567_v36, 0.0 }
 0x4c0   : > { %v2566_v14 = vadd.f32 %v5018_v60, %v2446_v12  ;;  %v2597_v19 = vmax.f32 %v2565_v44, 0.0 }
 0x4c1   : > { %v2600_v39 = vmax.f32 %v2568_v58, 0.0 }
 0x4c2   : > { %v2598_v5 = vmax.f32 %v2566_v14, 0.0 }
 0x4c3   : > { %v5033_v55 = vpack.c.bf16 %v2600_v39, %v2599_v38 }
 0x4c4   : > { %v2627_v56 = vpack.c.bf16 %v2598_v5, %v2597_v19 }
 0x4cc   : > { %v3692_v9 = vpop.f32.mrb[40].mxu1 }
 0x4cd   : > { %v2571_v40 = vadd.f32 %v3692_v9, %v5018_v60  ;;  %v2459_v13 = vpop.f32.mrb[41].mxu1 }
 0x4ce   : > { %v2569_v41 = vadd.f32 %v5018_v60, %v2459_v13  ;;  %v3693_v61 = vpop.f32.mrb[42].mxu1 }
 0x4cf   : > { %v2572_v42 = vadd.f32 %v3693_v61, %v5018_v60  ;;  %v2462_v43 = vpop.f32.mrb[43].mxu1  ;;  %v2603_v4 = vmax.f32 %v2571_v40, 0.0 }
 0x4d0   : > { %v2570_v3 = vadd.f32 %v5018_v60, %v2462_v43  ;;  %v2601_v29 = vmax.f32 %v2569_v41, 0.0 }
 0x4d1   : > { %v2604_v15 = vmax.f32 %v2572_v42, 0.0 }
 0x4d2   : > { %v2602_v46 = vmax.f32 %v2570_v3, 0.0 }
 0x4d3   : > { %v5039_v54 = vpack.c.bf16 %v2604_v15, %v2603_v4 }
 0x4d4   : > { %v5041_v45 = vpack.c.bf16 %v2602_v46, %v2601_v29 }
 0x4dc   : > { %v3696_v49 = vpop.f32.mrb[44].mxu1 }
 0x4dd   : > { %v2575_v62 = vadd.f32 %v3696_v49, %v5018_v60  ;;  %v2475_v34 = vpop.f32.mrb[45].mxu1 }
 0x4de   : > { %v2573_v35 = vadd.f32 %v5018_v60, %v2475_v34  ;;  %v3697_v18 = vpop.f32.mrb[46].mxu1 }
 0x4df   : > { %v2576_v50 = vadd.f32 %v3697_v18, %v5018_v60  ;;  %v2478_v7 = vpop.f32.mrb[47].mxu1  ;;  %v2607_v48 = vmax.f32 %v2575_v62, 0.0 }
 0x4e0   : > { %v2574_v33 = vadd.f32 %v5018_v60, %v2478_v7  ;;  %v2605_v8 = vmax.f32 %v2573_v35, 0.0 }
 0x4e1   : > { %v2608_v23 = vmax.f32 %v2576_v50, 0.0 }
 0x4e2   : > { %v2606_v51 = vmax.f32 %v2574_v33, 0.0  ;;  %v3990_v33 = vld [vmem:[%s4479_s9] ss:$8 sps:$4 sm:$0xff]  }
 0x4e3   : > { %v5047_v52 = vpack.c.bf16 %v2608_v23, %v2607_v48  ;;  %v3993_v48 = vld [vmem:[%s4479_s9 + $0x14] ss:$8 sps:$4 sm:$0xff]   ;;  %v3995_v23 = vld [vmem:[%s4479_s9 + $0x10] ss:$8 sps:$4 sm:$0xff]   ;;  %s5229_s9 = sld [smem:[#allocation14_spill]] }
 0x4e4   : > { %v5049_v16 = vpack.c.bf16 %v2606_v51, %v2605_v8  ;;  %v4000_v8 = vld [vmem:[#allocation8 + $0x20] sm:$0xff]   ;;  %v4002_v51 = vld [vmem:[#allocation8 + $0x30] sm:$0xff]  }
 0x4e5   : > { %3722 = vmatprep.subr.bf16.mxu1 %v4000_v8 }
 0x4e6   : > { %3723 = vmatpush3.bf16.msra.mxu1 %v4000_v8 }
 0x4e9   : > { %s610_s16 = sand.u32 1, %s5229_s9  }
 0x4ea   : > { %s3054_s24 = sshll.u32 %s610_s16, 5  ;;  %s5089_s15 = scalar_lea.sflag [#allocation4], %s610_s16 }
 0x4eb   : > { %s612_s25 = scalar_lea.vmem [#allocation9], %s3054_s24 }
 0x4ec   : > { %v3700_v63 = vpop.f32.mrb[48].mxu1  ;;  %s2882_s13 = sshll.u32 %s612_s25, 4  ;;  %s5082_s13 = int_to_ptr.vmem [resolvable:$true] %s2882_s13 }
 0x4ed   : > { %v2579_v53 = vadd.f32 %v3700_v63, %v5018_v60  ;;  %v2491_v28 = vpop.f32.mrb[49].mxu1  ;;  %v4003_v63 = vld [vmem:[#allocation8 + $0x38] sm:$0xff]   ;;  %s4100_s26 = scalar_lea.vmem %s5082_s13, 512  ;;  %p4107_p4 = scmp.lt.s32.totalorder %s5082_s13, %s4105_s19 }
 0x4ee   : > { %v2577_v0 = vadd.f32 %v5018_v60, %v2491_v28  ;;  %v3701_v47 = vpop.f32.mrb[50].mxu1  ;;  %p4101_p12 = scmp.ne.s32.totalorder %s5082_s13, %s4100_s26  ;;  %p4108_p13 = scmp.lt.s32.totalorder %s4106_s23, %s4100_s26 }
 0x4ef   : > { %v2580_v1 = vadd.f32 %v3701_v47, %v5018_v60  ;;  %v2494_v2 = vpop.f32.mrb[51].mxu1  ;;  %v2611_v25 = vmax.f32 %v2579_v53, 0.0 }
 0x4f0   : > { %v2578_v20 = vadd.f32 %v5018_v60, %v2494_v2  ;;  %v2609_v59 = vmax.f32 %v2577_v0, 0.0  ;;  %v2726_v2 = vpop.permute.xlu1 %2725  ;;  %p4102_p3 = pnand %p4101_p12, %p5233_p0  ;;  %p4109_p1 = por %p4108_p13, %p4107_p4 }
 0x4f1   : > { %v2612_v6 = vmax.f32 %v2580_v1, 0.0  ;;  %v2721_v1 = vpop.permute.xlu0 %2720 }
 0x4f2   : > { %v2610_v26 = vmax.f32 %v2578_v20, 0.0  ;;  %p4103_p7 = pneg %p4102_p3 }
 0x4f3   : > { %v2634_v27 = vpack.c.bf16 %v2612_v6, %v2611_v25 }
 0x4f4   : > { %v2633_v10 = vpack.c.bf16 %v2610_v26, %v2609_v59  ;;  %p4110_p9 = pnand %p4109_p1, %p4103_p7 }
 0x4f6   : > { %3484 = vmatprep.subr.bf16.mxu0 %v2633_v10 }
 0x4f7   : > { %3485 = vmatpush3.bf16.msra.mxu0 %v5027_v31 }
 0x4f8   : > { %3486 = vmatprep.subr.bf16.mxu0 %v2634_v27 }
 0x4fb   : > { %3487 = vmatpush3.bf16.msra.mxu0 %v5025_v22 }
 0x4fc   : > { %v3704_v17 = vpop.f32.mrb[52].mxu1 }
 0x4fd   : > { %v2583_v21 = vadd.f32 %v3704_v17, %v5018_v60  ;;  %v2507_v24 = vpop.f32.mrb[53].mxu1 }
 0x4fe   : > { %v2581_v30 = vadd.f32 %v5018_v60, %v2507_v24  ;;  %v3705_v32 = vpop.f32.mrb[54].mxu1  ;;  %v2731_v24 = vpop.permute.xlu0 %2730 }
 0x4ff   : > { %v2584_v36 = vadd.f32 %v3705_v32, %v5018_v60  ;;  %v2510_v11 = vpop.f32.mrb[55].mxu1  ;;  %v2615_v37 = vmax.f32 %v2583_v21, 0.0 }
 0x500   : > { %v2582_v44 = vadd.f32 %v5018_v60, %v2510_v11  ;;  %v2613_v58 = vmax.f32 %v2581_v30, 0.0  ;;  %v2736_v30 = vpop.permute.xlu1 %2735 }
 0x501   : > { %v2616_v57 = vmax.f32 %v2584_v36, 0.0 }
 0x502   : > { %v2614_v12 = vmax.f32 %v2582_v44, 0.0  ;;  %v3147_v44 = vld [vmem:[%s5230_s12] ss:$0 sm:$0xff] }
 0x503   : > { %v2636_v31 = vpack.c.bf16 %v2616_v57, %v2615_v37 }
 0x504   : > { %v2635_v14 = vpack.c.bf16 %v2614_v12, %v2613_v58 }
 0x506   : > { %3488 = vmatprep.subr.bf16.mxu0 %v2635_v14 }
 0x507   : > { %3489 = vmatpush3.bf16.msra.mxu0 %v2627_v56 }
 0x508   : > { %3490 = vmatprep.subr.bf16.mxu0 %v2636_v31 }
 0x50b   : > { %3491 = vmatpush3.bf16.msra.mxu0 %v5033_v55 }
 0x50c   : > { %v3708_v22 = vpop.f32.mrb[56].mxu1 }
 0x50d   : > { %v2587_v38 = vadd.f32 %v3708_v22, %v5018_v60  ;;  %v2523_v39 = vpop.f32.mrb[57].mxu1 }
 0x50e   : > { %v2585_v19 = vadd.f32 %v5018_v60, %v2523_v39  ;;  %v3709_v5 = vpop.f32.mrb[58].mxu1 }
 0x50f   : > { %v2588_v9 = vadd.f32 %v3709_v5, %v5018_v60  ;;  %v2526_v40 = vpop.f32.mrb[59].mxu1  ;;  %v2619_v41 = vmax.f32 %v2587_v38, 0.0 }
 0x510   : > { %v2586_v13 = vadd.f32 %v5018_v60, %v2526_v40  ;;  %v2617_v42 = vmax.f32 %v2585_v19, 0.0 }
 0x511   : > { %v2620_v61 = vmax.f32 %v2588_v9, 0.0 }
 0x512   : > { %v2618_v43 = vmax.f32 %v2586_v13, 0.0 }
 0x513   : > { %v2638_v56 = vpack.c.bf16 %v2620_v61, %v2619_v41 }
 0x514   : > { %v2637_v3 = vpack.c.bf16 %v2618_v43, %v2617_v42 }
 0x516   : > { %3492 = vmatprep.subr.bf16.mxu0 %v2637_v3 }
 0x517   : > { %3493 = vmatpush3.bf16.msra.mxu0 %v5041_v45 }
 0x518   : > { %3494 = vmatprep.subr.bf16.mxu0 %v2638_v56 }
 0x51b   : > { %3495 = vmatpush3.bf16.msra.mxu0 %v5039_v54 }
 0x51c   : > { %v3712_v55 = vpop.f32.mrb[60].mxu1 }
 0x51d   : > { %v2591_v4 = vadd.f32 %v3712_v55, %v5018_v60  ;;  %v2539_v15 = vpop.f32.mrb[61].mxu1 }
 0x51e   : > { %v2589_v29 = vadd.f32 %v5018_v60, %v2539_v15  ;;  %v3713_v46 = vpop.f32.mrb[62].mxu1 }
 0x51f   : > { %v2592_v49 = vadd.f32 %v3713_v46, %v5018_v60  ;;  %v2542_v62 = vpop.f32.mrb[63].mxu1  ;;  %v2623_v35 = vmax.f32 %v2591_v4, 0.0 }
 0x520   : > { %v2590_v34 = vadd.f32 %v5018_v60, %v2542_v62  ;;  %v2621_v18 = vmax.f32 %v2589_v29, 0.0  ;;  %v4001_v60 = vld [vmem:[#allocation8 + $0x28] sm:$0xff]  }
 0x521   : > { %v2624_v45 = vmax.f32 %v2592_v49, 0.0  ;;  %3724 = vmatprep.subr.bf16.mxu1 %v4001_v60 }
 0x522   : > { %v2622_v50 = vmax.f32 %v2590_v34, 0.0  ;;  %3725 = vmatpush3.bf16.msra.mxu1 %v4001_v60 }
 0x523   : > { %v2640_v54 = vpack.c.bf16 %v2624_v45, %v2623_v35  ;;  %3726 = vmatprep.subr.bf16.mxu1 %v4002_v51 }
 0x524   : > { %v2639_v7 = vpack.c.bf16 %v2622_v50, %v2621_v18 }
 0x526   : > { %3496 = vmatprep.subr.bf16.mxu0 %v2639_v7  ;;  %3727 = vmatpush3.bf16.msra.mxu1 %v4002_v51 }
 0x527   : > { %3497 = vmatpush3.bf16.msra.mxu0 %v5049_v16  ;;  %3728 = vmatprep.subr.bf16.mxu1 %v4003_v63 }
 0x528   : > { %3498 = vmatprep.subr.bf16.mxu0 %v2640_v54 }
 0x52a   : > { %3729 = vmatpush3.bf16.msra.mxu1 %v4003_v63 }
 0x52b   : > { %3499 = vmatpush3.bf16.msra.mxu0 %v5047_v52 }
 0x52e   : > { %2698 = vmatmul.mubr.bf16.vlgmr.msra.gmra.mrb[128].mxu0 %v3990_v33 }
 0x52f   : > { %2705 = vmatprep.mubr.bf16.mxu0 %v3993_v48 }
 0x536   : > { %2706 = vmatmul.mubr.bf16.gmra.mrb[132].mxu0 %v3995_v23 }
 0x601   : > { %v3500_v16 = vpop.f32.mrb[128].mxu0 }
 0x602   : > { %v3501_v53 = vpop.f32.mrb[129].mxu0 }
 0x603   : > { %v3502_v52 = vadd.f32 %v3501_v53, %v3500_v16  ;;  %v3503_v28 = vpop.f32.mrb[130].mxu0 }
 0x604   : > { %v3504_v0 = vpop.f32.mrb[131].mxu0 }
 0x605   : > { %v3505_v47 = vadd.f32 %v3504_v0, %v3503_v28  ;;  %v2738_v20 = vmul.f32 %v3502_v52, %v2721_v1 }
 0x607   : > { %v2739_v25 = vmul.f32 %v3505_v47, %v2726_v2 }
 0x609   : > { %v3506_v6 = vpop.f32.mrb[132].mxu0  ;;  %v2742_v59 = vpack.c.bf16 %v2739_v25, %v2738_v20 }
 0x60a   : > { %v3507_v26 = vpop.f32.mrb[133].mxu0 }
 0x60b   : > { %v3508_v27 = vadd.f32 %v3507_v26, %v3506_v6  ;;  %v3509_v10 = vpop.f32.mrb[134].mxu0  ;;  %3730 = vmatprep.mubr.bf16.mxu1 %v2742_v59 }
 0x60c   : > { %v3510_v17 = vpop.f32.mrb[135].mxu0 }
 0x60d   : > { %v3511_v21 = vadd.f32 %v3510_v17, %v3509_v10  ;;  %v2740_v32 = vmul.f32 %v3508_v27, %v2731_v24 }
 0x60f   : > { %v2741_v36 = vmul.f32 %v3511_v21, %v2736_v30 }
 0x611   : > { %v2743_v11 = vpack.c.bf16 %v2741_v36, %v2740_v32 }
 0x613   : > { %3731 = vmatmul.mubr.bf16.vlgmr.msra.gmra.mrb[64].mxu1 %v2743_v11 }
 0x6e6   : > { %v3732_v37 = vpop.f32.mrb[64].mxu1 }
 0x6e7   : > { %v2858_v57 = vadd.f32 %v3732_v37, %v3147_v44  ;;  %v2849_v58 = vpop.f32.mrb[65].mxu1 }
 0x6e8   : > { %v2850_v12 = vadd.f32 %v3147_v44, %v2849_v58  ;;  %v3733_v31 = vpop.f32.mrb[66].mxu1 }
 0x6e9   : > { %2866 = vst [vmem:[%s612_s25 + $0x10] sm:$0xff] %v2858_v57  ;;  %v2861_v14 = vadd.f32 %v3733_v31, %v3147_v44  ;;  %v2852_v22 = vpop.f32.mrb[67].mxu1 }
 0x6ea   : > { %2864 = vst [vmem:[%s612_s25] sm:$0xff] %v2850_v12  ;;  %v2853_v38 = vadd.f32 %v3147_v44, %v2852_v22 }
 0x6eb   : > { %2867 = vst [vmem:[%s612_s25 + $0x18] sm:$0xff] %v2861_v14 }
 0x6ec   : > { %2865 = vst [vmem:[%s612_s25 + $0x8] sm:$0xff] %v2853_v38 }
 0x6ed   : > { %4113 = shalt.err (!%p4110_p9)
}
 0x6ee   : > { %s4114_s9 = scalar_lea.hbm %s5087_s21, 512  ;;  %s4118_s17 = scalar_lea.hbm %s5232_s10, 1024 }
 0x6ef   : > { %p4115_p6 = scmp.ne.s32.totalorder %s5087_s21, %s4114_s9  ;;  %p4119_p10 = scmp.lt.u32.totalorder %s5087_s21, %s5232_s10 }
 0x6f0   : > { %p4120_p11 = scmp.lt.u32.totalorder %s4118_s17, %s4114_s9  ;;  %p4122_p3 = scmp.lt.u32.totalorder %s4114_s9, %s5087_s21 }
 0x6f1   : > { %p4116_p2 = pnand %p4115_p6, %p5233_p0 }
 0x6f2   : > { %p4121_p12 = por %p4120_p11, %p4119_p10 }
 0x6f3   : > { %p4117_p8 = pneg %p4116_p2 }
 0x6f4   : > { %p4123_p7 = por %p4122_p3, %p4121_p12 }
 0x6f6   : > { %p4124_p4 = pnand %p4123_p7, %p4117_p8 }
 0x6f8   : > { %4127 = shalt.err (!%p4124_p4)
}
 0x6f9   : > { %s4206_s25 = smov 128   ;;  %s4207_s28 = smov 8  }
 0x6fa   : > { %3808 = dma.vmem_to_hbm [thread:$0]  (%p5233_p0), %s5082_s13, 512, %s5087_s21, %s5089_s15, %s4206_s25, %s4206_s25, %s4207_s28  }
 0x6fb PF: > { %s5234_s18 = sld [smem:[#allocation13_spill]]  ;;  %s5235_s20 = sld [smem:[#allocation20_spill]] }
 0x701   : > { %s2897_s26 = sand.u32 1, %s5234_s18   ;;  %p5236_p13 = scmp.ne.s32.totalorder %s5235_s20, 0 }
 0x702   : > { %s2898_s0 = scalar_lea.sflag [#allocation4], %s2897_s26 }
 0x703   : > { %p3818_p1 = pnand %p3038_p5, %p5236_p13 }
 0x705   : > { %4165 = dma.done.wait (!%p3818_p1), %s2898_s0, 512  }
 0x706   : > { %4167 = vsyncadd (!%p3818_p1), %s2898_s0, 4294966784  ;;  %s5237_s14 = sld [smem:[#allocation16_spill]]  ;;  %s5238_s25 = sld [smem:[#allocation14_spill]] }
 0x707   : > { %s5239_s26 = sld [smem:[#allocation15_spill]]  ;;  %s5240_s27 = sld [smem:[#allocation18_spill]] }
 0x708   : > { %s5241_s19 = sld [smem:[#allocation17_spill]]  ;;  %s5242_s28 = smov %s4186_s29 }
 0x709   : > { %s5243_s29 = smov %s4190_s30 }
 0x70c   : > { %p27_p0 = scmp.ge.s32.totalorder %s5237_s14, 4  }
 0x70e   : > { %s5244_s30 = smov %s5241_s19  ;;  %29 = sbr.rel (!%p27_p0) target bundleno = 15 (0xf), region = 180 }
 0x715   :  { %2903 = vsyncpa [#allocation3], 1 }
 0x716   :  { %2905 = vsyncpa [#allocation3 + $0x1], 1 }
 0x717   :  { %2906 = vsyncpa [#allocation7], 1 }
 0x718   :  { %2907 = vsyncpa [#allocation4], 1 }
 0x719   :  { %2909 = vsyncpa [#allocation4 + $0x1], 1 }

</bundles_post_ra>
